<compile_context>
chip_gen: v5e
topology: v5e:2x2
jax: 0.10.0
libtpu: 0.0.40
codegen_flags: <defaults>
</compile_context>

<pallas_src>
import math
import functools
import numpy as np

import jax
import jax.numpy as jnp
from jax.experimental import pallas as pl
from jax.experimental.pallas import tpu as pltpu

LN_EPS = 1e-5  # torch.nn.LayerNorm default

# All grid axes below are reduction-free -> let Mosaic shard them across cores.
_PARALLEL = pltpu.CompilerParams(dimension_semantics=("parallel",))


# ----------------------------------------------------------------------------
# sin-cos positional embedding (numpy glue, identical to the PyTorch reference)
# ----------------------------------------------------------------------------
def get_2d_sincos_pos_embed_from_grid(embed_dim, pos):
    assert embed_dim % 2 == 0
    omega = np.arange(embed_dim // 2, dtype=np.float32) / (embed_dim / 2.0)
    omega = 1.0 / 10000 ** omega
    pos = pos.reshape(-1)
    out = np.einsum('m,d->md', pos, omega)
    return np.concatenate([np.sin(out), np.cos(out)], axis=1)


def get_2d_sincos_pos_embed(embed_dim, length, cls_token=False):
    grid_l = np.arange(length, dtype=np.float32).reshape([1, length])
    pos_embed = get_2d_sincos_pos_embed_from_grid(embed_dim, grid_l)
    if cls_token:
        pos_embed = np.concatenate([np.zeros([1, embed_dim]), pos_embed], axis=0)
    return pos_embed


# ----------------------------------------------------------------------------
# tiling helper
# ----------------------------------------------------------------------------
def _pick_tile_m(M, target=512):
    """Row tile for [M, D] slabs.

    Full M when small (full-array exception to the (8,128) rule); otherwise a
    large multiple-of-8 tile (`target`) so the grid has few steps (~0.35us of
    pipeline overhead each) and the MXU sees a tall LHS.  The ragged final
    block (when M % target != 0) is handled by Pallas: every op here is
    row-independent, and out-of-range rows are never written back.
    """
    if M <= target:
        return M
    return target


# ----------------------------------------------------------------------------
# in-kernel exact-erf GELU
# ----------------------------------------------------------------------------
_SQRT_HALF = 0.7071067811865476


def _gelu_erf(x):
    """Exact-erf GELU.  erf is evaluated with the Abramowitz-Stegun 7.1.26
    rational approximation (|err| < 2e-7), built only from exp/mul/add/where so
    it lowers on the TPU VPU/EUP inside the kernel.
    TODO(synk): switch to lax.erf once Mosaic guarantees erf lowering."""
    z = x * _SQRT_HALF
    az = jnp.abs(z)
    t = 1.0 / (1.0 + 0.3275911 * az)
    poly = ((((1.061405429 * t - 1.453152027) * t + 1.421413741) * t
             - 0.284496736) * t + 0.254829592) * t
    erf_abs = 1.0 - poly * jnp.exp(-az * az)
    erf_z = jnp.where(z < 0.0, -erf_abs, erf_abs)
    return 0.5 * x * (1.0 + erf_z)


def _layernorm_f32(x, g, b):
    x = x.astype(jnp.float32)
    mu = jnp.mean(x, axis=-1, keepdims=True)
    xc = x - mu
    var = jnp.mean(xc * xc, axis=-1, keepdims=True)
    return xc * jax.lax.rsqrt(var + LN_EPS) * g + b


# ----------------------------------------------------------------------------
# Pallas kernels
# ----------------------------------------------------------------------------
def _linear_kernel(x_ref, w_ref, b_ref, o_ref):
    acc = jnp.dot(x_ref[...].astype(jnp.float32), w_ref[...],
                  preferred_element_type=jnp.float32)
    o_ref[...] = (acc + b_ref[...]).astype(o_ref.dtype)


def linear_pallas(x2d, w, b):
    """y = x @ w + b.  x:[M,Din], w:[Din,Dout], b:[Dout]."""
    M, Din = x2d.shape
    Dout = w.shape[1]
    tm = _pick_tile_m(M)
    return pl.pallas_call(
        _linear_kernel,
        out_shape=jax.ShapeDtypeStruct((M, Dout), x2d.dtype),
        grid=(pl.cdiv(M, tm),),
        in_specs=[pl.BlockSpec((tm, Din), lambda i: (i, 0)),
                  pl.BlockSpec((Din, Dout), lambda i: (0, 0)),
                  pl.BlockSpec((1, Dout), lambda i: (0, 0))],
        out_specs=pl.BlockSpec((tm, Dout), lambda i: (i, 0)),
        compiler_params=_PARALLEL,
    )(x2d, w, b.reshape(1, Dout))


def _ln_linear_kernel(x_ref, g_ref, b_ref, w_ref, bias_ref, o_ref):
    h = _layernorm_f32(x_ref[...], g_ref[...], b_ref[...])
    acc = jnp.dot(h, w_ref[...], preferred_element_type=jnp.float32)
    o_ref[...] = (acc + bias_ref[...]).astype(o_ref.dtype)


def ln_linear_pallas(x2d, g, b, w, bias):
    """y = LayerNorm(x) @ w + bias, fused (LN1+QKV, and final norm+proj)."""
    M, Din = x2d.shape
    Dout = w.shape[1]
    tm = _pick_tile_m(M)
    return pl.pallas_call(
        _ln_linear_kernel,
        out_shape=jax.ShapeDtypeStruct((M, Dout), x2d.dtype),
        grid=(pl.cdiv(M, tm),),
        in_specs=[pl.BlockSpec((tm, Din), lambda i: (i, 0)),
                  pl.BlockSpec((1, Din), lambda i: (0, 0)),
                  pl.BlockSpec((1, Din), lambda i: (0, 0)),
                  pl.BlockSpec((Din, Dout), lambda i: (0, 0)),
                  pl.BlockSpec((1, Dout), lambda i: (0, 0))],
        out_specs=pl.BlockSpec((tm, Dout), lambda i: (i, 0)),
        compiler_params=_PARALLEL,
    )(x2d, g.reshape(1, Din), b.reshape(1, Din), w, bias.reshape(1, Dout))


def _linear_residual_kernel(x_ref, w_ref, b_ref, r_ref, o_ref):
    acc = jnp.dot(x_ref[...].astype(jnp.float32), w_ref[...],
                  preferred_element_type=jnp.float32)
    o_ref[...] = (acc + b_ref[...] + r_ref[...].astype(jnp.float32)).astype(o_ref.dtype)


def linear_residual_pallas(x2d, w, b, res):
    """y = x @ w + b + res  (attention output projection + residual add)."""
    M, Din = x2d.shape
    Dout = w.shape[1]
    tm = _pick_tile_m(M)
    return pl.pallas_call(
        _linear_residual_kernel,
        out_shape=jax.ShapeDtypeStruct((M, Dout), x2d.dtype),
        grid=(pl.cdiv(M, tm),),
        in_specs=[pl.BlockSpec((tm, Din), lambda i: (i, 0)),
                  pl.BlockSpec((Din, Dout), lambda i: (0, 0)),
                  pl.BlockSpec((1, Dout), lambda i: (0, 0)),
                  pl.BlockSpec((tm, Dout), lambda i: (i, 0))],
        out_specs=pl.BlockSpec((tm, Dout), lambda i: (i, 0)),
        compiler_params=_PARALLEL,
    )(x2d, w, b.reshape(1, Dout), res)


def _mlp_block_kernel(x_ref, g_ref, b_ref, w1_ref, b1_ref, w2_ref, b2_ref, o_ref):
    x = x_ref[...].astype(jnp.float32)
    h = _layernorm_f32(x, g_ref[...], b_ref[...])
    m = jnp.dot(h, w1_ref[...], preferred_element_type=jnp.float32) + b1_ref[...]
    m = _gelu_erf(m)                      # erf GELU on the EUP, hidden under MXU work
    m = jnp.dot(m, w2_ref[...], preferred_element_type=jnp.float32) + b2_ref[...]
    o_ref[...] = (x + m).astype(o_ref.dtype)


def mlp_block_pallas(x2d, g, b, w1, b1, w2, b2):
    """y = x + fc2(GELU(fc1(LayerNorm(x)))), fully fused.
    The [tm, 4D] hidden activation never touches HBM.
    TODO(synk): K-tile fc1/fc2 with a grid reduction axis for D large enough
    that both weights no longer fit comfortably in v7x's 64 MiB VMEM."""
    M, D = x2d.shape
    Dh = w1.shape[1]
    tm = _pick_tile_m(M, target=256)      # keep the [tm, Dh] hidden tile modest
    return pl.pallas_call(
        _mlp_block_kernel,
        out_shape=jax.ShapeDtypeStruct((M, D), x2d.dtype),
        grid=(pl.cdiv(M, tm),),
        in_specs=[pl.BlockSpec((tm, D), lambda i: (i, 0)),
                  pl.BlockSpec((1, D), lambda i: (0, 0)),
                  pl.BlockSpec((1, D), lambda i: (0, 0)),
                  pl.BlockSpec((D, Dh), lambda i: (0, 0)),
                  pl.BlockSpec((1, Dh), lambda i: (0, 0)),
                  pl.BlockSpec((Dh, D), lambda i: (0, 0)),
                  pl.BlockSpec((1, D), lambda i: (0, 0))],
        out_specs=pl.BlockSpec((tm, D), lambda i: (i, 0)),
        compiler_params=_PARALLEL,
    )(x2d, g.reshape(1, D), b.reshape(1, D), w1, b1.reshape(1, Dh), w2, b2.reshape(1, D))


def _attention_kernel(qkv_ref, o_ref, *, num_heads, scale):
    """One batch element, all heads.  qkv_ref:[N, 3D] laid out [3, H, hd] along
    the last axis (PyTorch nn.Linear qkv ordering); o_ref:[N, D] lane-dense."""
    N, three_d = qkv_ref.shape
    D = three_d // 3
    hd = D // num_heads
    qkv = qkv_ref[...].astype(jnp.float32)
    outs = []
    for h in range(num_heads):            # static unroll; slices stay in VMEM/vregs
        qh = qkv[:, h * hd:(h + 1) * hd]
        kh = qkv[:, D + h * hd:D + (h + 1) * hd]
        vh = qkv[:, 2 * D + h * hd:2 * D + (h + 1) * hd]
        # q @ k^T via dot_general contracting last dims: MXU consumes K directly,
        # no in-VMEM transpose.
        s = jax.lax.dot_general(qh, kh, (((1,), (1,)), ((), ())),
                                preferred_element_type=jnp.float32) * scale
        s = s - jnp.max(s, axis=-1, keepdims=True)
        p = jnp.exp(s)
        p = p * pl.reciprocal(jnp.sum(p, axis=-1, keepdims=True), approx=True)
        outs.append(jax.lax.dot_general(p, vh, (((1,), (0,)), ((), ())),
                                        preferred_element_type=jnp.float32))
    o_ref[...] = jnp.concatenate(outs, axis=-1).astype(o_ref.dtype)


def attention_pallas(qkv3, num_heads, scale):
    """qkv3: [B, N, 3D] -> multi-head softmax attention -> [B, N, D].
    Head split / merge happens inside the kernel, so no XLA transposes of the
    activation are needed, and the output block last dim is D (lane-dense)."""
    Bt, N, three_d = qkv3.shape
    D = three_d // 3
    kern = functools.partial(_attention_kernel, num_heads=num_heads, scale=scale)
    return pl.pallas_call(
        kern,
        out_shape=jax.ShapeDtypeStruct((Bt, N, D), qkv3.dtype),
        grid=(Bt,),
        in_specs=[pl.BlockSpec((None, N, three_d), lambda i: (i, 0, 0))],
        out_specs=pl.BlockSpec((None, N, D), lambda i: (i, 0, 0)),
        compiler_params=_PARALLEL,   # lets v7x split the batch axis across its 2 TCs
    )(qkv3)


# ----------------------------------------------------------------------------
# Pure-JAX reference ops (used only to validate the Pallas path)
# ----------------------------------------------------------------------------
def linear_ref(x2d, w, b):
    return x2d @ w + b


def ln_linear_ref(x2d, g, b, w, bias):
    return _layernorm_f32(x2d, g, b) @ w + bias


def linear_residual_ref(x2d, w, b, res):
    return x2d @ w + b + res


def mlp_block_ref(x2d, g, b, w1, b1, w2, b2):
    h = _layernorm_f32(x2d, g, b)
    m = jax.nn.gelu(h @ w1 + b1, approximate=False)
    return x2d + (m @ w2 + b2)


def attention_ref(qkv3, num_heads, scale):
    Bt, N, three_d = qkv3.shape
    D = three_d // 3
    hd = D // num_heads
    qkv = qkv3.reshape(Bt, N, 3, num_heads, hd).transpose(2, 0, 3, 1, 4)
    q, k, v = qkv[0], qkv[1], qkv[2]                       # [B, H, N, hd]
    s = jnp.einsum('bhnd,bhmd->bhnm', q, k) * scale
    p = jax.nn.softmax(s, axis=-1)
    o = jnp.einsum('bhnm,bhmd->bhnd', p, v)
    return o.transpose(0, 2, 1, 3).reshape(Bt, N, D)


PALLAS_OPS = dict(linear=linear_pallas, ln_linear=ln_linear_pallas,
                  linear_residual=linear_residual_pallas,
                  mlp_block=mlp_block_pallas, attention=attention_pallas)
REF_OPS = dict(linear=linear_ref, ln_linear=ln_linear_ref,
               linear_residual=linear_residual_ref,
               mlp_block=mlp_block_ref, attention=attention_ref)


# ----------------------------------------------------------------------------
# Model glue (masking helpers, block, full forward)
# ----------------------------------------------------------------------------
def apply_masks_jax(x, masks):
    """x: [B, N, D]; masks: list of [B, K] int index arrays; gather along dim 1."""
    outs = []
    for m in masks:
        idx = jnp.broadcast_to(m[:, :, None], (m.shape[0], m.shape[1], x.shape[-1]))
        outs.append(jnp.take_along_axis(x, idx, axis=1))
    return jnp.concatenate(outs, axis=0)


def repeat_interleave_batch_jax(x, B, repeat):
    """Matches torch repeat_interleave_batch: chunk i of size B repeated `repeat`
    times, chunks concatenated in order.  Single repeat+reshape, no concat chain."""
    Nc = x.shape[0] // B
    tail = x.shape[1:]
    return jnp.repeat(x.reshape((Nc, B) + tail), repeat, axis=0).reshape((Nc * repeat * B,) + tail)


def block_forward(bp, x, num_heads, ops):
    Bt, N, D = x.shape
    hd = D // num_heads
    x2d = x.reshape(Bt * N, D)
    # 1) LN1 + QKV projection (fused)
    qkv = ops['ln_linear'](x2d, bp['ln1_g'], bp['ln1_b'], bp['qkv_w'], bp['qkv_b'])
    # 2) multi-head attention (all heads of one batch element per grid step)
    attn = ops['attention'](qkv.reshape(Bt, N, 3 * D), num_heads, hd ** (-0.5))
    # 3) output projection + residual (DropPath(0.0) / Dropout(0.0) == identity)
    x2d = ops['linear_residual'](attn.reshape(Bt * N, D), bp['proj_w'], bp['proj_b'], x2d)
    # 4) LN2 + fc1 + exact GELU + fc2 + residual (fused MLP)
    x2d = ops['mlp_block'](x2d, bp['ln2_g'], bp['ln2_b'],
                           bp['fc1_w'], bp['fc1_b'], bp['fc2_w'], bp['fc2_b'])
    return x2d.reshape(Bt, N, D)


def predictor_forward(params, x, masks_x, masks, num_heads, ops):
    if not isinstance(masks_x, (list, tuple)):
        masks_x = [masks_x]
    if not isinstance(masks, (list, tuple)):
        masks = [masks]
    B = x.shape[0] // len(masks_x)
    Bx, Nx, E = x.shape
    D = params['pred_embed_w'].shape[1]

    # predictor_embed
    x = ops['linear'](x.reshape(-1, E), params['pred_embed_w'],
                      params['pred_embed_b']).reshape(Bx, Nx, D)

    # add masked positional embedding to context tokens
    pe = params['pos_embed']
    pos_all = jnp.broadcast_to(pe, (B,) + pe.shape[1:])
    x = x + apply_masks_jax(pos_all, masks_x)
    N_ctxt = x.shape[1]

    # build prediction tokens
    pos_embs = apply_masks_jax(pos_all, masks)
    pos_embs = repeat_interleave_batch_jax(pos_embs, B, repeat=len(masks_x))
    pred_tokens = params['mask_token'] + pos_embs

    x = jnp.tile(x, (len(masks), 1, 1))
    x = jnp.concatenate([x, pred_tokens], axis=1)

    # transformer blocks
    for bp in params['blocks']:
        x = block_forward(bp, x, num_heads, ops)

    # slice prediction tokens, then fused final LayerNorm + projection
    # (LN is per-token, so norm-then-slice == slice-then-norm)
    x = x[:, N_ctxt:]
    Bp, Np, _ = x.shape
    out = ops['ln_linear'](x.reshape(-1, D), params['norm_g'], params['norm_b'],
                           params['proj_w'], params['proj_b'])
    return out.reshape(Bp, Np, E)


# ----------------------------------------------------------------------------
# Deterministic parameter init (matches the shapes of the PyTorch __init__)
# ----------------------------------------------------------------------------
def trunc_normal(key, shape, std):
    return (std * jax.random.truncated_normal(key, -2.0, 2.0, shape)).astype(jnp.float32)


def init_block_params(key, D, mlp_ratio, init_std, layer_id):
    Dh = int(D * mlp_ratio)
    ks = jax.random.split(key, 4)
    rescale = 1.0 / math.sqrt(2.0 * layer_id)  # fix_init_weight()
    return dict(
        ln1_g=jnp.ones((D,), jnp.float32), ln1_b=jnp.zeros((D,), jnp.float32),
        qkv_w=trunc_normal(ks[0], (D, 3 * D), init_std),
        qkv_b=jnp.zeros((3 * D,), jnp.float32),
        proj_w=trunc_normal(ks[1], (D, D), init_std) * rescale,
        proj_b=jnp.zeros((D,), jnp.float32),
        ln2_g=jnp.ones((D,), jnp.float32), ln2_b=jnp.zeros((D,), jnp.float32),
        fc1_w=trunc_normal(ks[2], (D, Dh), init_std),
        fc1_b=jnp.zeros((Dh,), jnp.float32),
        fc2_w=trunc_normal(ks[3], (Dh, D), init_std) * rescale,
        fc2_b=jnp.zeros((D,), jnp.float32),
    )


def init_predictor_params(key, embed_dim, pred_dim, depth, mlp_ratio, init_std=0.02):
    ks = jax.random.split(key, depth + 3)
    pos = get_2d_sincos_pos_embed(pred_dim, 32, cls_token=False)  # fixed length 32
    return dict(
        pred_embed_w=trunc_normal(ks[0], (embed_dim, pred_dim), init_std),
        pred_embed_b=jnp.zeros((pred_dim,), jnp.float32),
        mask_token=trunc_normal(ks[1], (1, 1, pred_dim), init_std),
        pos_embed=jnp.asarray(pos, jnp.float32)[None, :, :],  # [1, 32, pred_dim]
        blocks=[init_block_params(ks[3 + i], pred_dim, mlp_ratio, init_std, i + 1)
                for i in range(depth)],
        norm_g=jnp.ones((pred_dim,), jnp.float32),
        norm_b=jnp.zeros((pred_dim,), jnp.float32),
        proj_w=trunc_normal(ks[2], (pred_dim, embed_dim), init_std),
        proj_b=jnp.zeros((embed_dim,), jnp.float32),
    )


# ----------------------------------------------------------------------------
if __name__ == "__main__":
    # small config consistent with the module: embed_dim -> predictor_embed_dim -> embed_dim
    embed_dim, pred_dim, depth, num_heads, mlp_ratio = 32, 16, 2, 4, 4.0
    B, N_ctxt, N_pred = 2, 8, 4   # context / prediction token counts (indices into 32 positions)

    key = jax.random.PRNGKey(0)
    kparam, kx = jax.random.split(key)
    params = init_predictor_params(kparam, embed_dim, pred_dim, depth, mlp_ratio)

    # encoder output for the context tokens: [B * len(masks_x), N_ctxt, embed_dim]
    x = jax.random.normal(kx, (B, N_ctxt, embed_dim), dtype=jnp.float32)
    masks_x = [jnp.tile(jnp.arange(N_ctxt, dtype=jnp.int32)[None, :], (B, 1))]
    masks = [jnp.tile(jnp.arange(N_ctxt, N_ctxt + N_pred, dtype=jnp.int32)[None, :], (B, 1))]

    fwd_pallas = jax.jit(functools.partial(predictor_forward,
                                           num_heads=num_heads, ops=PALLAS_OPS))
    fwd_ref = jax.jit(functools.partial(predictor_forward,
                                        num_heads=num_heads, ops=REF_OPS))

    out = jax.block_until_ready(fwd_pallas(params, x, masks_x, masks))
    assert out.shape == (B * len(masks) * len(masks_x), N_pred, embed_dim), out.shape

    ref = jax.block_until_ready(fwd_ref(params, x, masks_x, masks))
    # approx-reciprocal softmax + polynomial erf => tiny, bounded deviation from ref
    np.testing.assert_allclose(np.asarray(out), np.asarray(ref), rtol=5e-3, atol=1e-3)

    print("KERNEL_OK")
</pallas_src>

<mosaic_0001>
module attributes {stable_mosaic.version = 11 : i64} {
  func.func @_ln_linear_kernel(%arg0: i32, %arg1: memref<24x16xf32, #tpu.memory_space<vmem>>, %arg2: memref<1x16xf32, #tpu.memory_space<vmem>>, %arg3: memref<1x16xf32, #tpu.memory_space<vmem>>, %arg4: memref<16x48xf32, #tpu.memory_space<vmem>>, %arg5: memref<1x48xf32, #tpu.memory_space<vmem>>, %arg6: memref<24x48xf32, #tpu.memory_space<vmem>>) attributes {dimension_semantics = [#tpu.dimension_semantics<parallel>], iteration_bounds = array<i64: 1>, scalar_prefetch = 0 : i64, scratch_operands = 0 : i64, tpu.core_type = #tpu.core_type<tc>, window_params = [{transform_indices = @transform_0, window_bounds = array<i64: 24, 16>}, {pipeline_mode = #tpu.pipeline_mode<synchronous>, transform_indices = @transform_1, window_bounds = array<i64: 1, 16>}, {pipeline_mode = #tpu.pipeline_mode<synchronous>, transform_indices = @transform_2, window_bounds = array<i64: 1, 16>}, {pipeline_mode = #tpu.pipeline_mode<synchronous>, transform_indices = @transform_3, window_bounds = array<i64: 16, 48>}, {pipeline_mode = #tpu.pipeline_mode<synchronous>, transform_indices = @transform_4, window_bounds = array<i64: 1, 48>}, {transform_indices = @transform_5, window_bounds = array<i64: 24, 48>}]} {
    %c0 = arith.constant 0 : index
    %c0_0 = arith.constant 0 : index
    %0 = vector.load %arg1[%c0, %c0_0] : memref<24x16xf32, #tpu.memory_space<vmem>>, vector<24x16xf32>
    %c0_1 = arith.constant 0 : index
    %c0_2 = arith.constant 0 : index
    %1 = vector.load %arg2[%c0_1, %c0_2] : memref<1x16xf32, #tpu.memory_space<vmem>>, vector<1x16xf32>
    %c0_3 = arith.constant 0 : index
    %c0_4 = arith.constant 0 : index
    %2 = vector.load %arg3[%c0_3, %c0_4] : memref<1x16xf32, #tpu.memory_space<vmem>>, vector<1x16xf32>
    %cst = arith.constant dense<0.000000e+00> : vector<24xf32>
    %3 = vector.multi_reduction <add>, %0, %cst [1] : vector<24x16xf32> to vector<24xf32>
    %4 = vector.shape_cast %3 : vector<24xf32> to vector<24x1xf32>
    %cst_5 = arith.constant 1.600000e+01 : f32
    %5 = vector.broadcast %cst_5 : f32 to vector<24x1xf32>
    %6 = arith.divf %4, %5 : vector<24x1xf32>
    %7 = vector.broadcast %6 : vector<24x1xf32> to vector<24x16xf32>
    %8 = arith.subf %0, %7 : vector<24x16xf32>
    %9 = arith.mulf %8, %8 : vector<24x16xf32>
    %cst_6 = arith.constant dense<0.000000e+00> : vector<24xf32>
    %10 = vector.multi_reduction <add>, %9, %cst_6 [1] : vector<24x16xf32> to vector<24xf32>
    %11 = vector.shape_cast %10 : vector<24xf32> to vector<24x1xf32>
    %cst_7 = arith.constant 1.600000e+01 : f32
    %12 = vector.broadcast %cst_7 : f32 to vector<24x1xf32>
    %13 = arith.divf %11, %12 : vector<24x1xf32>
    %cst_8 = arith.constant 9.99999974E-6 : f32
    %14 = vector.broadcast %cst_8 : f32 to vector<24x1xf32>
    %15 = arith.addf %13, %14 : vector<24x1xf32>
    %16 = math.rsqrt %15 : vector<24x1xf32>
    %17 = vector.broadcast %16 : vector<24x1xf32> to vector<24x16xf32>
    %18 = arith.mulf %8, %17 : vector<24x16xf32>
    %19 = vector.broadcast %1 : vector<1x16xf32> to vector<24x16xf32>
    %20 = arith.mulf %18, %19 : vector<24x16xf32>
    %21 = vector.broadcast %2 : vector<1x16xf32> to vector<24x16xf32>
    %22 = arith.addf %20, %21 : vector<24x16xf32>
    %c0_9 = arith.constant 0 : index
    %c0_10 = arith.constant 0 : index
    %23 = vector.load %arg4[%c0_9, %c0_10] : memref<16x48xf32, #tpu.memory_space<vmem>>, vector<16x48xf32>
    %cst_11 = arith.constant dense<0.000000e+00> : vector<24x48xf32>
    %24 = tpu.matmul %22, %23, %cst_11 {dimension_numbers = #tpu.dot_dimension_numbers<[1], [0], [0], [1], [0, 0, 1, 1], [], []>} : vector<24x16xf32>, vector<16x48xf32>, vector<24x48xf32> -> vector<24x48xf32>
    %c0_12 = arith.constant 0 : index
    %c0_13 = arith.constant 0 : index
    %25 = vector.load %arg5[%c0_12, %c0_13] : memref<1x48xf32, #tpu.memory_space<vmem>>, vector<1x48xf32>
    %26 = vector.broadcast %25 : vector<1x48xf32> to vector<24x48xf32>
    %27 = arith.addf %24, %26 : vector<24x48xf32>
    %c0_14 = arith.constant 0 : index
    %c0_15 = arith.constant 0 : index
    %28 = vector.load %arg6[%c0_14, %c0_15] : memref<24x48xf32, #tpu.memory_space<vmem>>, vector<24x48xf32>
    tpu.vector_store %arg6[%c0_14, %c0_15], %27 {strides = array<i32>} : memref<24x48xf32, #tpu.memory_space<vmem>>, vector<24x48xf32>,
    return
  }
  func.func @transform_0(%arg0: i32) -> (i32, i32) {
    %c0_i32 = arith.constant 0 : i32
    %c0_i32_0 = arith.constant 0 : i32
    return %arg0, %c0_i32 : i32, i32
  }
  func.func @transform_1(%arg0: i32) -> (i32, i32) {
    %c0_i32 = arith.constant 0 : i32
    %c0_i32_0 = arith.constant 0 : i32
    %c0_i32_1 = arith.constant 0 : i32
    return %c0_i32, %c0_i32_0 : i32, i32
  }
  func.func @transform_2(%arg0: i32) -> (i32, i32) {
    %c0_i32 = arith.constant 0 : i32
    %c0_i32_0 = arith.constant 0 : i32
    %c0_i32_1 = arith.constant 0 : i32
    return %c0_i32, %c0_i32_0 : i32, i32
  }
  func.func @transform_3(%arg0: i32) -> (i32, i32) {
    %c0_i32 = arith.constant 0 : i32
    %c0_i32_0 = arith.constant 0 : i32
    %c0_i32_1 = arith.constant 0 : i32
    return %c0_i32, %c0_i32_0 : i32, i32
  }
  func.func @transform_4(%arg0: i32) -> (i32, i32) {
    %c0_i32 = arith.constant 0 : i32
    %c0_i32_0 = arith.constant 0 : i32
    %c0_i32_1 = arith.constant 0 : i32
    return %c0_i32, %c0_i32_0 : i32, i32
  }
  func.func @transform_5(%arg0: i32) -> (i32, i32) {
    %c0_i32 = arith.constant 0 : i32
    %c0_i32_0 = arith.constant 0 : i32
    return %arg0, %c0_i32 : i32, i32
  }
}

module attributes {stable_mosaic.version = 11 : i64} {
  func.func @_linear_kernel(%arg0: i32, %arg1: memref<16x32xf32, #tpu.memory_space<vmem>>, %arg2: memref<32x16xf32, #tpu.memory_space<vmem>>, %arg3: memref<1x16xf32, #tpu.memory_space<vmem>>, %arg4: memref<16x16xf32, #tpu.memory_space<vmem>>) attributes {dimension_semantics = [#tpu.dimension_semantics<parallel>], iteration_bounds = array<i64: 1>, scalar_prefetch = 0 : i64, scratch_operands = 0 : i64, tpu.core_type = #tpu.core_type<tc>, window_params = [{transform_indices = @transform_0, window_bounds = array<i64: 16, 32>}, {pipeline_mode = #tpu.pipeline_mode<synchronous>, transform_indices = @transform_1, window_bounds = array<i64: 32, 16>}, {pipeline_mode = #tpu.pipeline_mode<synchronous>, transform_indices = @transform_2, window_bounds = array<i64: 1, 16>}, {transform_indices = @transform_3, window_bounds = array<i64: 16, 16>}]} {
    %c0 = arith.constant 0 : index
    %c0_0 = arith.constant 0 : index
    %0 = vector.load %arg1[%c0, %c0_0] : memref<16x32xf32, #tpu.memory_space<vmem>>, vector<16x32xf32>
    %c0_1 = arith.constant 0 : index
    %c0_2 = arith.constant 0 : index
    %1 = vector.load %arg2[%c0_1, %c0_2] : memref<32x16xf32, #tpu.memory_space<vmem>>, vector<32x16xf32>
    %cst = arith.constant dense<0.000000e+00> : vector<16x16xf32>
    %2 = tpu.matmul %0, %1, %cst {dimension_numbers = #tpu.dot_dimension_numbers<[1], [0], [0], [1], [0, 0, 1, 1], [], []>} : vector<16x32xf32>, vector<32x16xf32>, vector<16x16xf32> -> vector<16x16xf32>
    %c0_3 = arith.constant 0 : index
    %c0_4 = arith.constant 0 : index
    %3 = vector.load %arg3[%c0_3, %c0_4] : memref<1x16xf32, #tpu.memory_space<vmem>>, vector<1x16xf32>
    %4 = vector.broadcast %3 : vector<1x16xf32> to vector<16x16xf32>
    %5 = arith.addf %2, %4 : vector<16x16xf32>
    %c0_5 = arith.constant 0 : index
    %c0_6 = arith.constant 0 : index
    %6 = vector.load %arg4[%c0_5, %c0_6] : memref<16x16xf32, #tpu.memory_space<vmem>>, vector<16x16xf32>
    tpu.vector_store %arg4[%c0_5, %c0_6], %5 {strides = array<i32>} : memref<16x16xf32, #tpu.memory_space<vmem>>, vector<16x16xf32>,
    return
  }
  func.func @transform_0(%arg0: i32) -> (i32, i32) {
    %c0_i32 = arith.constant 0 : i32
    %c0_i32_0 = arith.constant 0 : i32
    return %arg0, %c0_i32 : i32, i32
  }
  func.func @transform_1(%arg0: i32) -> (i32, i32) {
    %c0_i32 = arith.constant 0 : i32
    %c0_i32_0 = arith.constant 0 : i32
    %c0_i32_1 = arith.constant 0 : i32
    return %c0_i32, %c0_i32_0 : i32, i32
  }
  func.func @transform_2(%arg0: i32) -> (i32, i32) {
    %c0_i32 = arith.constant 0 : i32
    %c0_i32_0 = arith.constant 0 : i32
    %c0_i32_1 = arith.constant 0 : i32
    return %c0_i32, %c0_i32_0 : i32, i32
  }
  func.func @transform_3(%arg0: i32) -> (i32, i32) {
    %c0_i32 = arith.constant 0 : i32
    %c0_i32_0 = arith.constant 0 : i32
    return %arg0, %c0_i32 : i32, i32
  }
}

module attributes {stable_mosaic.version = 11 : i64} {
  func.func @_attention_kernel(%arg0: i32, %arg1: memref<1x12x48xf32, #tpu.memory_space<vmem>>, %arg2: memref<1x12x16xf32, #tpu.memory_space<vmem>>) attributes {dimension_semantics = [#tpu.dimension_semantics<parallel>], iteration_bounds = array<i64: 2>, scalar_prefetch = 0 : i64, scratch_operands = 0 : i64, tpu.core_type = #tpu.core_type<tc>, window_params = [{transform_indices = @transform_0, window_bounds = array<i64: 1, 12, 48>}, {transform_indices = @transform_1, window_bounds = array<i64: 1, 12, 16>}]} {
    %c0 = arith.constant 0 : index
    %c0_0 = arith.constant 0 : index
    %c0_1 = arith.constant 0 : index
    %0 = vector.load %arg1[%c0, %c0_0, %c0_1] : memref<1x12x48xf32, #tpu.memory_space<vmem>>, vector<1x12x48xf32>
    %1 = vector.shape_cast %0 : vector<1x12x48xf32> to vector<12x48xf32>
    %2 = vector.extract_strided_slice %1 {offsets = [0, 0], sizes = [12, 4], strides = [1, 1]} : vector<12x48xf32> to vector<12x4xf32>
    %3 = vector.extract_strided_slice %1 {offsets = [0, 16], sizes = [12, 4], strides = [1, 1]} : vector<12x48xf32> to vector<12x4xf32>
    %4 = vector.extract_strided_slice %1 {offsets = [0, 32], sizes = [12, 4], strides = [1, 1]} : vector<12x48xf32> to vector<12x4xf32>
    %cst = arith.constant dense<0.000000e+00> : vector<12x12xf32>
    %5 = tpu.matmul %2, %3, %cst {dimension_numbers = #tpu.dot_dimension_numbers<[1], [1], [0], [0], [0, 0, 1, 0], [], []>} : vector<12x4xf32>, vector<12x4xf32>, vector<12x12xf32> -> vector<12x12xf32>
    %cst_2 = arith.constant 5.000000e-01 : f32
    %6 = vector.broadcast %cst_2 : f32 to vector<12x12xf32>
    %7 = arith.mulf %5, %6 : vector<12x12xf32>
    %cst_3 = arith.constant dense<0xFF800000> : vector<12xf32>
    %8 = vector.multi_reduction <maximumf>, %7, %cst_3 [1] : vector<12x12xf32> to vector<12xf32>
    %9 = vector.shape_cast %8 : vector<12xf32> to vector<12x1xf32>
    %10 = vector.broadcast %9 : vector<12x1xf32> to vector<12x12xf32>
    %11 = arith.subf %7, %10 : vector<12x12xf32>
    %12 = math.exp %11 : vector<12x12xf32>
    %cst_4 = arith.constant dense<0.000000e+00> : vector<12xf32>
    %13 = vector.multi_reduction <add>, %12, %cst_4 [1] : vector<12x12xf32> to vector<12xf32>
    %14 = vector.shape_cast %13 : vector<12xf32> to vector<12x1xf32>
    %15 = tpu.reciprocal %14 {approx = true} : vector<12x1xf32> -> vector<12x1xf32>
    %16 = vector.broadcast %15 : vector<12x1xf32> to vector<12x12xf32>
    %17 = arith.mulf %12, %16 : vector<12x12xf32>
    %cst_5 = arith.constant dense<0.000000e+00> : vector<12x4xf32>
    %18 = tpu.matmul %17, %4, %cst_5 {dimension_numbers = #tpu.dot_dimension_numbers<[1], [0], [0], [1], [0, 0, 1, 1], [], []>} : vector<12x12xf32>, vector<12x4xf32>, vector<12x4xf32> -> vector<12x4xf32>
    %19 = vector.extract_strided_slice %1 {offsets = [0, 4], sizes = [12, 4], strides = [1, 1]} : vector<12x48xf32> to vector<12x4xf32>
    %20 = vector.extract_strided_slice %1 {offsets = [0, 20], sizes = [12, 4], strides = [1, 1]} : vector<12x48xf32> to vector<12x4xf32>
    %21 = vector.extract_strided_slice %1 {offsets = [0, 36], sizes = [12, 4], strides = [1, 1]} : vector<12x48xf32> to vector<12x4xf32>
    %cst_6 = arith.constant dense<0.000000e+00> : vector<12x12xf32>
    %22 = tpu.matmul %19, %20, %cst_6 {dimension_numbers = #tpu.dot_dimension_numbers<[1], [1], [0], [0], [0, 0, 1, 0], [], []>} : vector<12x4xf32>, vector<12x4xf32>, vector<12x12xf32> -> vector<12x12xf32>
    %cst_7 = arith.constant 5.000000e-01 : f32
    %23 = vector.broadcast %cst_7 : f32 to vector<12x12xf32>
    %24 = arith.mulf %22, %23 : vector<12x12xf32>
    %cst_8 = arith.constant dense<0xFF800000> : vector<12xf32>
    %25 = vector.multi_reduction <maximumf>, %24, %cst_8 [1] : vector<12x12xf32> to vector<12xf32>
    %26 = vector.shape_cast %25 : vector<12xf32> to vector<12x1xf32>
    %27 = vector.broadcast %26 : vector<12x1xf32> to vector<12x12xf32>
    %28 = arith.subf %24, %27 : vector<12x12xf32>
    %29 = math.exp %28 : vector<12x12xf32>
    %cst_9 = arith.constant dense<0.000000e+00> : vector<12xf32>
    %30 = vector.multi_reduction <add>, %29, %cst_9 [1] : vector<12x12xf32> to vector<12xf32>
    %31 = vector.shape_cast %30 : vector<12xf32> to vector<12x1xf32>
    %32 = tpu.reciprocal %31 {approx = true} : vector<12x1xf32> -> vector<12x1xf32>
    %33 = vector.broadcast %32 : vector<12x1xf32> to vector<12x12xf32>
    %34 = arith.mulf %29, %33 : vector<12x12xf32>
    %cst_10 = arith.constant dense<0.000000e+00> : vector<12x4xf32>
    %35 = tpu.matmul %34, %21, %cst_10 {dimension_numbers = #tpu.dot_dimension_numbers<[1], [0], [0], [1], [0, 0, 1, 1], [], []>} : vector<12x12xf32>, vector<12x4xf32>, vector<12x4xf32> -> vector<12x4xf32>
    %36 = vector.extract_strided_slice %1 {offsets = [0, 8], sizes = [12, 4], strides = [1, 1]} : vector<12x48xf32> to vector<12x4xf32>
    %37 = vector.extract_strided_slice %1 {offsets = [0, 24], sizes = [12, 4], strides = [1, 1]} : vector<12x48xf32> to vector<12x4xf32>
    %38 = vector.extract_strided_slice %1 {offsets = [0, 40], sizes = [12, 4], strides = [1, 1]} : vector<12x48xf32> to vector<12x4xf32>
    %cst_11 = arith.constant dense<0.000000e+00> : vector<12x12xf32>
    %39 = tpu.matmul %36, %37, %cst_11 {dimension_numbers = #tpu.dot_dimension_numbers<[1], [1], [0], [0], [0, 0, 1, 0], [], []>} : vector<12x4xf32>, vector<12x4xf32>, vector<12x12xf32> -> vector<12x12xf32>
    %cst_12 = arith.constant 5.000000e-01 : f32
    %40 = vector.broadcast %cst_12 : f32 to vector<12x12xf32>
    %41 = arith.mulf %39, %40 : vector<12x12xf32>
    %cst_13 = arith.constant dense<0xFF800000> : vector<12xf32>
    %42 = vector.multi_reduction <maximumf>, %41, %cst_13 [1] : vector<12x12xf32> to vector<12xf32>
    %43 = vector.shape_cast %42 : vector<12xf32> to vector<12x1xf32>
    %44 = vector.broadcast %43 : vector<12x1xf32> to vector<12x12xf32>
    %45 = arith.subf %41, %44 : vector<12x12xf32>
    %46 = math.exp %45 : vector<12x12xf32>
    %cst_14 = arith.constant dense<0.000000e+00> : vector<12xf32>
    %47 = vector.multi_reduction <add>, %46, %cst_14 [1] : vector<12x12xf32> to vector<12xf32>
    %48 = vector.shape_cast %47 : vector<12xf32> to vector<12x1xf32>
    %49 = tpu.reciprocal %48 {approx = true} : vector<12x1xf32> -> vector<12x1xf32>
    %50 = vector.broadcast %49 : vector<12x1xf32> to vector<12x12xf32>
    %51 = arith.mulf %46, %50 : vector<12x12xf32>
    %cst_15 = arith.constant dense<0.000000e+00> : vector<12x4xf32>
    %52 = tpu.matmul %51, %38, %cst_15 {dimension_numbers = #tpu.dot_dimension_numbers<[1], [0], [0], [1], [0, 0, 1, 1], [], []>} : vector<12x12xf32>, vector<12x4xf32>, vector<12x4xf32> -> vector<12x4xf32>
    %53 = vector.extract_strided_slice %1 {offsets = [0, 12], sizes = [12, 4], strides = [1, 1]} : vector<12x48xf32> to vector<12x4xf32>
    %54 = vector.extract_strided_slice %1 {offsets = [0, 28], sizes = [12, 4], strides = [1, 1]} : vector<12x48xf32> to vector<12x4xf32>
    %55 = vector.extract_strided_slice %1 {offsets = [0, 44], sizes = [12, 4], strides = [1, 1]} : vector<12x48xf32> to vector<12x4xf32>
    %cst_16 = arith.constant dense<0.000000e+00> : vector<12x12xf32>
    %56 = tpu.matmul %53, %54, %cst_16 {dimension_numbers = #tpu.dot_dimension_numbers<[1], [1], [0], [0], [0, 0, 1, 0], [], []>} : vector<12x4xf32>, vector<12x4xf32>, vector<12x12xf32> -> vector<12x12xf32>
    %cst_17 = arith.constant 5.000000e-01 : f32
    %57 = vector.broadcast %cst_17 : f32 to vector<12x12xf32>
    %58 = arith.mulf %56, %57 : vector<12x12xf32>
    %cst_18 = arith.constant dense<0xFF800000> : vector<12xf32>
    %59 = vector.multi_reduction <maximumf>, %58, %cst_18 [1] : vector<12x12xf32> to vector<12xf32>
    %60 = vector.shape_cast %59 : vector<12xf32> to vector<12x1xf32>
    %61 = vector.broadcast %60 : vector<12x1xf32> to vector<12x12xf32>
    %62 = arith.subf %58, %61 : vector<12x12xf32>
    %63 = math.exp %62 : vector<12x12xf32>
    %cst_19 = arith.constant dense<0.000000e+00> : vector<12xf32>
    %64 = vector.multi_reduction <add>, %63, %cst_19 [1] : vector<12x12xf32> to vector<12xf32>
    %65 = vector.shape_cast %64 : vector<12xf32> to vector<12x1xf32>
    %66 = tpu.reciprocal %65 {approx = true} : vector<12x1xf32> -> vector<12x1xf32>
    %67 = vector.broadcast %66 : vector<12x1xf32> to vector<12x12xf32>
    %68 = arith.mulf %63, %67 : vector<12x12xf32>
    %cst_20 = arith.constant dense<0.000000e+00> : vector<12x4xf32>
    %69 = tpu.matmul %68, %55, %cst_20 {dimension_numbers = #tpu.dot_dimension_numbers<[1], [0], [0], [1], [0, 0, 1, 1], [], []>} : vector<12x12xf32>, vector<12x4xf32>, vector<12x4xf32> -> vector<12x4xf32>
    %70 = tpu.concatenate %18, %35, %52, %69 in 1 : vector<12x4xf32>, vector<12x4xf32>, vector<12x4xf32>, vector<12x4xf32> -> vector<12x16xf32>
    %c0_21 = arith.constant 0 : index
    %c0_22 = arith.constant 0 : index
    %c0_23 = arith.constant 0 : index
    %71 = vector.load %arg2[%c0_21, %c0_22, %c0_23] : memref<1x12x16xf32, #tpu.memory_space<vmem>>, vector<1x12x16xf32>
    %72 = vector.shape_cast %71 : vector<1x12x16xf32> to vector<12x16xf32>
    %73 = vector.shape_cast %70 : vector<12x16xf32> to vector<1x12x16xf32>
    tpu.vector_store %arg2[%c0_21, %c0_22, %c0_23], %73 {strides = array<i32>} : memref<1x12x16xf32, #tpu.memory_space<vmem>>, vector<1x12x16xf32>,
    return
  }
  func.func @transform_0(%arg0: i32) -> (i32, i32, i32) {
    %c0_i32 = arith.constant 0 : i32
    %c0_i32_0 = arith.constant 0 : i32
    %c0_i32_1 = arith.constant 0 : i32
    return %arg0, %c0_i32, %c0_i32_0 : i32, i32, i32
  }
  func.func @transform_1(%arg0: i32) -> (i32, i32, i32) {
    %c0_i32 = arith.constant 0 : i32
    %c0_i32_0 = arith.constant 0 : i32
    %c0_i32_1 = arith.constant 0 : i32
    return %arg0, %c0_i32, %c0_i32_0 : i32, i32, i32
  }
}

module attributes {stable_mosaic.version = 11 : i64} {
  func.func @_linear_residual_kernel(%arg0: i32, %arg1: memref<24x16xf32, #tpu.memory_space<vmem>>, %arg2: memref<16x16xf32, #tpu.memory_space<vmem>>, %arg3: memref<1x16xf32, #tpu.memory_space<vmem>>, %arg4: memref<24x16xf32, #tpu.memory_space<vmem>>, %arg5: memref<24x16xf32, #tpu.memory_space<vmem>>) attributes {dimension_semantics = [#tpu.dimension_semantics<parallel>], iteration_bounds = array<i64: 1>, scalar_prefetch = 0 : i64, scratch_operands = 0 : i64, tpu.core_type = #tpu.core_type<tc>, window_params = [{transform_indices = @transform_0, window_bounds = array<i64: 24, 16>}, {pipeline_mode = #tpu.pipeline_mode<synchronous>, transform_indices = @transform_1, window_bounds = array<i64: 16, 16>}, {pipeline_mode = #tpu.pipeline_mode<synchronous>, transform_indices = @transform_2, window_bounds = array<i64: 1, 16>}, {transform_indices = @transform_3, window_bounds = array<i64: 24, 16>}, {transform_indices = @transform_4, window_bounds = array<i64: 24, 16>}]} {
    %c0 = arith.constant 0 : index
    %c0_0 = arith.constant 0 : index
    %0 = vector.load %arg1[%c0, %c0_0] : memref<24x16xf32, #tpu.memory_space<vmem>>, vector<24x16xf32>
    %c0_1 = arith.constant 0 : index
    %c0_2 = arith.constant 0 : index
    %1 = vector.load %arg2[%c0_1, %c0_2] : memref<16x16xf32, #tpu.memory_space<vmem>>, vector<16x16xf32>
    %cst = arith.constant dense<0.000000e+00> : vector<24x16xf32>
    %2 = tpu.matmul %0, %1, %cst {dimension_numbers = #tpu.dot_dimension_numbers<[1], [0], [0], [1], [0, 0, 1, 1], [], []>} : vector<24x16xf32>, vector<16x16xf32>, vector<24x16xf32> -> vector<24x16xf32>
    %c0_3 = arith.constant 0 : index
    %c0_4 = arith.constant 0 : index
    %3 = vector.load %arg3[%c0_3, %c0_4] : memref<1x16xf32, #tpu.memory_space<vmem>>, vector<1x16xf32>
    %4 = vector.broadcast %3 : vector<1x16xf32> to vector<24x16xf32>
    %5 = arith.addf %2, %4 : vector<24x16xf32>
    %c0_5 = arith.constant 0 : index
    %c0_6 = arith.constant 0 : index
    %6 = vector.load %arg4[%c0_5, %c0_6] : memref<24x16xf32, #tpu.memory_space<vmem>>, vector<24x16xf32>
    %7 = arith.addf %5, %6 : vector<24x16xf32>
    %c0_7 = arith.constant 0 : index
    %c0_8 = arith.constant 0 : index
    %8 = vector.load %arg5[%c0_7, %c0_8] : memref<24x16xf32, #tpu.memory_space<vmem>>, vector<24x16xf32>
    tpu.vector_store %arg5[%c0_7, %c0_8], %7 {strides = array<i32>} : memref<24x16xf32, #tpu.memory_space<vmem>>, vector<24x16xf32>,
    return
  }
  func.func @transform_0(%arg0: i32) -> (i32, i32) {
    %c0_i32 = arith.constant 0 : i32
    %c0_i32_0 = arith.constant 0 : i32
    return %arg0, %c0_i32 : i32, i32
  }
  func.func @transform_1(%arg0: i32) -> (i32, i32) {
    %c0_i32 = arith.constant 0 : i32
    %c0_i32_0 = arith.constant 0 : i32
    %c0_i32_1 = arith.constant 0 : i32
    return %c0_i32, %c0_i32_0 : i32, i32
  }
  func.func @transform_2(%arg0: i32) -> (i32, i32) {
    %c0_i32 = arith.constant 0 : i32
    %c0_i32_0 = arith.constant 0 : i32
    %c0_i32_1 = arith.constant 0 : i32
    return %c0_i32, %c0_i32_0 : i32, i32
  }
  func.func @transform_3(%arg0: i32) -> (i32, i32) {
    %c0_i32 = arith.constant 0 : i32
    %c0_i32_0 = arith.constant 0 : i32
    return %arg0, %c0_i32 : i32, i32
  }
  func.func @transform_4(%arg0: i32) -> (i32, i32) {
    %c0_i32 = arith.constant 0 : i32
    %c0_i32_0 = arith.constant 0 : i32
    return %arg0, %c0_i32 : i32, i32
  }
}

module attributes {stable_mosaic.version = 11 : i64} {
  func.func @_mlp_block_kernel(%arg0: i32, %arg1: memref<24x16xf32, #tpu.memory_space<vmem>>, %arg2: memref<1x16xf32, #tpu.memory_space<vmem>>, %arg3: memref<1x16xf32, #tpu.memory_space<vmem>>, %arg4: memref<16x64xf32, #tpu.memory_space<vmem>>, %arg5: memref<1x64xf32, #tpu.memory_space<vmem>>, %arg6: memref<64x16xf32, #tpu.memory_space<vmem>>, %arg7: memref<1x16xf32, #tpu.memory_space<vmem>>, %arg8: memref<24x16xf32, #tpu.memory_space<vmem>>) attributes {dimension_semantics = [#tpu.dimension_semantics<parallel>], iteration_bounds = array<i64: 1>, scalar_prefetch = 0 : i64, scratch_operands = 0 : i64, tpu.core_type = #tpu.core_type<tc>, window_params = [{transform_indices = @transform_0, window_bounds = array<i64: 24, 16>}, {pipeline_mode = #tpu.pipeline_mode<synchronous>, transform_indices = @transform_1, window_bounds = array<i64: 1, 16>}, {pipeline_mode = #tpu.pipeline_mode<synchronous>, transform_indices = @transform_2, window_bounds = array<i64: 1, 16>}, {pipeline_mode = #tpu.pipeline_mode<synchronous>, transform_indices = @transform_3, window_bounds = array<i64: 16, 64>}, {pipeline_mode = #tpu.pipeline_mode<synchronous>, transform_indices = @transform_4, window_bounds = array<i64: 1, 64>}, {pipeline_mode = #tpu.pipeline_mode<synchronous>, transform_indices = @transform_5, window_bounds = array<i64: 64, 16>}, {pipeline_mode = #tpu.pipeline_mode<synchronous>, transform_indices = @transform_6, window_bounds = array<i64: 1, 16>}, {transform_indices = @transform_7, window_bounds = array<i64: 24, 16>}]} {
    %c0 = arith.constant 0 : index
    %c0_0 = arith.constant 0 : index
    %0 = vector.load %arg1[%c0, %c0_0] : memref<24x16xf32, #tpu.memory_space<vmem>>, vector<24x16xf32>
    %c0_1 = arith.constant 0 : index
    %c0_2 = arith.constant 0 : index
    %1 = vector.load %arg2[%c0_1, %c0_2] : memref<1x16xf32, #tpu.memory_space<vmem>>, vector<1x16xf32>
    %c0_3 = arith.constant 0 : index
    %c0_4 = arith.constant 0 : index
    %2 = vector.load %arg3[%c0_3, %c0_4] : memref<1x16xf32, #tpu.memory_space<vmem>>, vector<1x16xf32>
    %cst = arith.constant dense<0.000000e+00> : vector<24xf32>
    %3 = vector.multi_reduction <add>, %0, %cst [1] : vector<24x16xf32> to vector<24xf32>
    %4 = vector.shape_cast %3 : vector<24xf32> to vector<24x1xf32>
    %cst_5 = arith.constant 1.600000e+01 : f32
    %5 = vector.broadcast %cst_5 : f32 to vector<24x1xf32>
    %6 = arith.divf %4, %5 : vector<24x1xf32>
    %7 = vector.broadcast %6 : vector<24x1xf32> to vector<24x16xf32>
    %8 = arith.subf %0, %7 : vector<24x16xf32>
    %9 = arith.mulf %8, %8 : vector<24x16xf32>
    %cst_6 = arith.constant dense<0.000000e+00> : vector<24xf32>
    %10 = vector.multi_reduction <add>, %9, %cst_6 [1] : vector<24x16xf32> to vector<24xf32>
    %11 = vector.shape_cast %10 : vector<24xf32> to vector<24x1xf32>
    %cst_7 = arith.constant 1.600000e+01 : f32
    %12 = vector.broadcast %cst_7 : f32 to vector<24x1xf32>
    %13 = arith.divf %11, %12 : vector<24x1xf32>
    %cst_8 = arith.constant 9.99999974E-6 : f32
    %14 = vector.broadcast %cst_8 : f32 to vector<24x1xf32>
    %15 = arith.addf %13, %14 : vector<24x1xf32>
    %16 = math.rsqrt %15 : vector<24x1xf32>
    %17 = vector.broadcast %16 : vector<24x1xf32> to vector<24x16xf32>
    %18 = arith.mulf %8, %17 : vector<24x16xf32>
    %19 = vector.broadcast %1 : vector<1x16xf32> to vector<24x16xf32>
    %20 = arith.mulf %18, %19 : vector<24x16xf32>
    %21 = vector.broadcast %2 : vector<1x16xf32> to vector<24x16xf32>
    %22 = arith.addf %20, %21 : vector<24x16xf32>
    %c0_9 = arith.constant 0 : index
    %c0_10 = arith.constant 0 : index
    %23 = vector.load %arg4[%c0_9, %c0_10] : memref<16x64xf32, #tpu.memory_space<vmem>>, vector<16x64xf32>
    %cst_11 = arith.constant dense<0.000000e+00> : vector<24x64xf32>
    %24 = tpu.matmul %22, %23, %cst_11 {dimension_numbers = #tpu.dot_dimension_numbers<[1], [0], [0], [1], [0, 0, 1, 1], [], []>} : vector<24x16xf32>, vector<16x64xf32>, vector<24x64xf32> -> vector<24x64xf32>
    %c0_12 = arith.constant 0 : index
    %c0_13 = arith.constant 0 : index
    %25 = vector.load %arg5[%c0_12, %c0_13] : memref<1x64xf32, #tpu.memory_space<vmem>>, vector<1x64xf32>
    %26 = vector.broadcast %25 : vector<1x64xf32> to vector<24x64xf32>
    %27 = arith.addf %24, %26 : vector<24x64xf32>
    %cst_14 = arith.constant 0.707106769 : f32
    %28 = vector.broadcast %cst_14 : f32 to vector<24x64xf32>
    %29 = arith.mulf %27, %28 : vector<24x64xf32>
    %30 = math.absf %29 : vector<24x64xf32>
    %cst_15 = arith.constant 0.327591091 : f32
    %31 = vector.broadcast %cst_15 : f32 to vector<24x64xf32>
    %32 = arith.mulf %31, %30 : vector<24x64xf32>
    %cst_16 = arith.constant 1.000000e+00 : f32
    %33 = vector.broadcast %cst_16 : f32 to vector<24x64xf32>
    %34 = arith.addf %33, %32 : vector<24x64xf32>
    %cst_17 = arith.constant 1.000000e+00 : f32
    %35 = vector.broadcast %cst_17 : f32 to vector<24x64xf32>
    %36 = arith.divf %35, %34 : vector<24x64xf32>
    %cst_18 = arith.constant 1.06140542 : f32
    %37 = vector.broadcast %cst_18 : f32 to vector<24x64xf32>
    %38 = arith.mulf %37, %36 : vector<24x64xf32>
    %cst_19 = arith.constant 1.45315206 : f32
    %39 = vector.broadcast %cst_19 : f32 to vector<24x64xf32>
    %40 = arith.subf %38, %39 : vector<24x64xf32>
    %41 = arith.mulf %40, %36 : vector<24x64xf32>
    %cst_20 = arith.constant 1.42141378 : f32
    %42 = vector.broadcast %cst_20 : f32 to vector<24x64xf32>
    %43 = arith.addf %41, %42 : vector<24x64xf32>
    %44 = arith.mulf %43, %36 : vector<24x64xf32>
    %cst_21 = arith.constant 0.284496725 : f32
    %45 = vector.broadcast %cst_21 : f32 to vector<24x64xf32>
    %46 = arith.subf %44, %45 : vector<24x64xf32>
    %47 = arith.mulf %46, %36 : vector<24x64xf32>
    %cst_22 = arith.constant 0.254829586 : f32
    %48 = vector.broadcast %cst_22 : f32 to vector<24x64xf32>
    %49 = arith.addf %47, %48 : vector<24x64xf32>
    %50 = arith.mulf %49, %36 : vector<24x64xf32>
    %cst_23 = arith.constant 0.000000e+00 : f32
    %51 = vector.broadcast %cst_23 : f32 to vector<24x64xf32>
    %52 = arith.subf %51, %30 : vector<24x64xf32>
    %53 = arith.mulf %52, %30 : vector<24x64xf32>
    %54 = math.exp %53 : vector<24x64xf32>
    %55 = arith.mulf %50, %54 : vector<24x64xf32>
    %cst_24 = arith.constant 1.000000e+00 : f32
    %56 = vector.broadcast %cst_24 : f32 to vector<24x64xf32>
    %57 = arith.subf %56, %55 : vector<24x64xf32>
    %cst_25 = arith.constant 0.000000e+00 : f32
    %58 = vector.broadcast %cst_25 : f32 to vector<24x64xf32>
    %59 = arith.cmpf olt, %29, %58 : vector<24x64xf32>
    %cst_26 = arith.constant 0.000000e+00 : f32
    %60 = vector.broadcast %cst_26 : f32 to vector<24x64xf32>
    %61 = arith.subf %60, %57 : vector<24x64xf32>
    %62 = arith.select %59, %61, %57 : vector<24x64xi1>, vector<24x64xf32>
    %cst_27 = arith.constant 5.000000e-01 : f32
    %63 = vector.broadcast %cst_27 : f32 to vector<24x64xf32>
    %64 = arith.mulf %63, %27 : vector<24x64xf32>
    %cst_28 = arith.constant 1.000000e+00 : f32
    %65 = vector.broadcast %cst_28 : f32 to vector<24x64xf32>
    %66 = arith.addf %65, %62 : vector<24x64xf32>
    %67 = arith.mulf %64, %66 : vector<24x64xf32>
    %c0_29 = arith.constant 0 : index
    %c0_30 = arith.constant 0 : index
    %68 = vector.load %arg6[%c0_29, %c0_30] : memref<64x16xf32, #tpu.memory_space<vmem>>, vector<64x16xf32>
    %cst_31 = arith.constant dense<0.000000e+00> : vector<24x16xf32>
    %69 = tpu.matmul %67, %68, %cst_31 {dimension_numbers = #tpu.dot_dimension_numbers<[1], [0], [0], [1], [0, 0, 1, 1], [], []>} : vector<24x64xf32>, vector<64x16xf32>, vector<24x16xf32> -> vector<24x16xf32>
    %c0_32 = arith.constant 0 : index
    %c0_33 = arith.constant 0 : index
    %70 = vector.load %arg7[%c0_32, %c0_33] : memref<1x16xf32, #tpu.memory_space<vmem>>, vector<1x16xf32>
    %71 = vector.broadcast %70 : vector<1x16xf32> to vector<24x16xf32>
    %72 = arith.addf %69, %71 : vector<24x16xf32>
    %73 = arith.addf %0, %72 : vector<24x16xf32>
    %c0_34 = arith.constant 0 : index
    %c0_35 = arith.constant 0 : index
    %74 = vector.load %arg8[%c0_34, %c0_35] : memref<24x16xf32, #tpu.memory_space<vmem>>, vector<24x16xf32>
    tpu.vector_store %arg8[%c0_34, %c0_35], %73 {strides = array<i32>} : memref<24x16xf32, #tpu.memory_space<vmem>>, vector<24x16xf32>,
    return
  }
  func.func @transform_0(%arg0: i32) -> (i32, i32) {
    %c0_i32 = arith.constant 0 : i32
    %c0_i32_0 = arith.constant 0 : i32
    return %arg0, %c0_i32 : i32, i32
  }
  func.func @transform_1(%arg0: i32) -> (i32, i32) {
    %c0_i32 = arith.constant 0 : i32
    %c0_i32_0 = arith.constant 0 : i32
    %c0_i32_1 = arith.constant 0 : i32
    return %c0_i32, %c0_i32_0 : i32, i32
  }
  func.func @transform_2(%arg0: i32) -> (i32, i32) {
    %c0_i32 = arith.constant 0 : i32
    %c0_i32_0 = arith.constant 0 : i32
    %c0_i32_1 = arith.constant 0 : i32
    return %c0_i32, %c0_i32_0 : i32, i32
  }
  func.func @transform_3(%arg0: i32) -> (i32, i32) {
    %c0_i32 = arith.constant 0 : i32
    %c0_i32_0 = arith.constant 0 : i32
    %c0_i32_1 = arith.constant 0 : i32
    return %c0_i32, %c0_i32_0 : i32, i32
  }
  func.func @transform_4(%arg0: i32) -> (i32, i32) {
    %c0_i32 = arith.constant 0 : i32
    %c0_i32_0 = arith.constant 0 : i32
    %c0_i32_1 = arith.constant 0 : i32
    return %c0_i32, %c0_i32_0 : i32, i32
  }
  func.func @transform_5(%arg0: i32) -> (i32, i32) {
    %c0_i32 = arith.constant 0 : i32
    %c0_i32_0 = arith.constant 0 : i32
    %c0_i32_1 = arith.constant 0 : i32
    return %c0_i32, %c0_i32_0 : i32, i32
  }
  func.func @transform_6(%arg0: i32) -> (i32, i32) {
    %c0_i32 = arith.constant 0 : i32
    %c0_i32_0 = arith.constant 0 : i32
    %c0_i32_1 = arith.constant 0 : i32
    return %c0_i32, %c0_i32_0 : i32, i32
  }
  func.func @transform_7(%arg0: i32) -> (i32, i32) {
    %c0_i32 = arith.constant 0 : i32
    %c0_i32_0 = arith.constant 0 : i32
    return %arg0, %c0_i32 : i32, i32
  }
}

module attributes {stable_mosaic.version = 11 : i64} {
  func.func @_ln_linear_kernel(%arg0: i32, %arg1: memref<8x16xf32, #tpu.memory_space<vmem>>, %arg2: memref<1x16xf32, #tpu.memory_space<vmem>>, %arg3: memref<1x16xf32, #tpu.memory_space<vmem>>, %arg4: memref<16x32xf32, #tpu.memory_space<vmem>>, %arg5: memref<1x32xf32, #tpu.memory_space<vmem>>, %arg6: memref<8x32xf32, #tpu.memory_space<vmem>>) attributes {dimension_semantics = [#tpu.dimension_semantics<parallel>], iteration_bounds = array<i64: 1>, scalar_prefetch = 0 : i64, scratch_operands = 0 : i64, tpu.core_type = #tpu.core_type<tc>, window_params = [{transform_indices = @transform_0, window_bounds = array<i64: 8, 16>}, {pipeline_mode = #tpu.pipeline_mode<synchronous>, transform_indices = @transform_1, window_bounds = array<i64: 1, 16>}, {pipeline_mode = #tpu.pipeline_mode<synchronous>, transform_indices = @transform_2, window_bounds = array<i64: 1, 16>}, {pipeline_mode = #tpu.pipeline_mode<synchronous>, transform_indices = @transform_3, window_bounds = array<i64: 16, 32>}, {pipeline_mode = #tpu.pipeline_mode<synchronous>, transform_indices = @transform_4, window_bounds = array<i64: 1, 32>}, {transform_indices = @transform_5, window_bounds = array<i64: 8, 32>}]} {
    %c0 = arith.constant 0 : index
    %c0_0 = arith.constant 0 : index
    %0 = vector.load %arg1[%c0, %c0_0] : memref<8x16xf32, #tpu.memory_space<vmem>>, vector<8x16xf32>
    %c0_1 = arith.constant 0 : index
    %c0_2 = arith.constant 0 : index
    %1 = vector.load %arg2[%c0_1, %c0_2] : memref<1x16xf32, #tpu.memory_space<vmem>>, vector<1x16xf32>
    %c0_3 = arith.constant 0 : index
    %c0_4 = arith.constant 0 : index
    %2 = vector.load %arg3[%c0_3, %c0_4] : memref<1x16xf32, #tpu.memory_space<vmem>>, vector<1x16xf32>
    %cst = arith.constant dense<0.000000e+00> : vector<8xf32>
    %3 = vector.multi_reduction <add>, %0, %cst [1] : vector<8x16xf32> to vector<8xf32>
    %4 = vector.shape_cast %3 : vector<8xf32> to vector<8x1xf32>
    %cst_5 = arith.constant 1.600000e+01 : f32
    %5 = vector.broadcast %cst_5 : f32 to vector<8x1xf32>
    %6 = arith.divf %4, %5 : vector<8x1xf32>
    %7 = vector.broadcast %6 : vector<8x1xf32> to vector<8x16xf32>
    %8 = arith.subf %0, %7 : vector<8x16xf32>
    %9 = arith.mulf %8, %8 : vector<8x16xf32>
    %cst_6 = arith.constant dense<0.000000e+00> : vector<8xf32>
    %10 = vector.multi_reduction <add>, %9, %cst_6 [1] : vector<8x16xf32> to vector<8xf32>
    %11 = vector.shape_cast %10 : vector<8xf32> to vector<8x1xf32>
    %cst_7 = arith.constant 1.600000e+01 : f32
    %12 = vector.broadcast %cst_7 : f32 to vector<8x1xf32>
    %13 = arith.divf %11, %12 : vector<8x1xf32>
    %cst_8 = arith.constant 9.99999974E-6 : f32
    %14 = vector.broadcast %cst_8 : f32 to vector<8x1xf32>
    %15 = arith.addf %13, %14 : vector<8x1xf32>
    %16 = math.rsqrt %15 : vector<8x1xf32>
    %17 = vector.broadcast %16 : vector<8x1xf32> to vector<8x16xf32>
    %18 = arith.mulf %8, %17 : vector<8x16xf32>
    %19 = vector.broadcast %1 : vector<1x16xf32> to vector<8x16xf32>
    %20 = arith.mulf %18, %19 : vector<8x16xf32>
    %21 = vector.broadcast %2 : vector<1x16xf32> to vector<8x16xf32>
    %22 = arith.addf %20, %21 : vector<8x16xf32>
    %c0_9 = arith.constant 0 : index
    %c0_10 = arith.constant 0 : index
    %23 = vector.load %arg4[%c0_9, %c0_10] : memref<16x32xf32, #tpu.memory_space<vmem>>, vector<16x32xf32>
    %cst_11 = arith.constant dense<0.000000e+00> : vector<8x32xf32>
    %24 = tpu.matmul %22, %23, %cst_11 {dimension_numbers = #tpu.dot_dimension_numbers<[1], [0], [0], [1], [0, 0, 1, 1], [], []>} : vector<8x16xf32>, vector<16x32xf32>, vector<8x32xf32> -> vector<8x32xf32>
    %c0_12 = arith.constant 0 : index
    %c0_13 = arith.constant 0 : index
    %25 = vector.load %arg5[%c0_12, %c0_13] : memref<1x32xf32, #tpu.memory_space<vmem>>, vector<1x32xf32>
    %26 = vector.broadcast %25 : vector<1x32xf32> to vector<8x32xf32>
    %27 = arith.addf %24, %26 : vector<8x32xf32>
    %c0_14 = arith.constant 0 : index
    %c0_15 = arith.constant 0 : index
    %28 = vector.load %arg6[%c0_14, %c0_15] : memref<8x32xf32, #tpu.memory_space<vmem>>, vector<8x32xf32>
    tpu.vector_store %arg6[%c0_14, %c0_15], %27 {strides = array<i32>} : memref<8x32xf32, #tpu.memory_space<vmem>>, vector<8x32xf32>,
    return
  }
  func.func @transform_0(%arg0: i32) -> (i32, i32) {
    %c0_i32 = arith.constant 0 : i32
    %c0_i32_0 = arith.constant 0 : i32
    return %arg0, %c0_i32 : i32, i32
  }
  func.func @transform_1(%arg0: i32) -> (i32, i32) {
    %c0_i32 = arith.constant 0 : i32
    %c0_i32_0 = arith.constant 0 : i32
    %c0_i32_1 = arith.constant 0 : i32
    return %c0_i32, %c0_i32_0 : i32, i32
  }
  func.func @transform_2(%arg0: i32) -> (i32, i32) {
    %c0_i32 = arith.constant 0 : i32
    %c0_i32_0 = arith.constant 0 : i32
    %c0_i32_1 = arith.constant 0 : i32
    return %c0_i32, %c0_i32_0 : i32, i32
  }
  func.func @transform_3(%arg0: i32) -> (i32, i32) {
    %c0_i32 = arith.constant 0 : i32
    %c0_i32_0 = arith.constant 0 : i32
    %c0_i32_1 = arith.constant 0 : i32
    return %c0_i32, %c0_i32_0 : i32, i32
  }
  func.func @transform_4(%arg0: i32) -> (i32, i32) {
    %c0_i32 = arith.constant 0 : i32
    %c0_i32_0 = arith.constant 0 : i32
    %c0_i32_1 = arith.constant 0 : i32
    return %c0_i32, %c0_i32_0 : i32, i32
  }
  func.func @transform_5(%arg0: i32) -> (i32, i32) {
    %c0_i32 = arith.constant 0 : i32
    %c0_i32_0 = arith.constant 0 : i32
    return %arg0, %c0_i32 : i32, i32
  }
}

</mosaic_0001>

<bundles_post_ra>
// kernel: predictor_forward.12
= control target key start
LH: loop header
LB: loop body
LE: loop exit
PB: predicated region body
PF: predicated region fallthrough
CT: control target
= control target key end

     0   :  { %s734_s6 = smov 0   ;;  %s842_s0 = inlined_call_operand.vmem [shape: f32[2,12,48], index: 0, kind: input, shape index: {}]   ;;  %s843_s1 = inlined_call_operand.vmem [shape: f32[2,12,16], index: 1, kind: output, shape index: {}]  }
   0x1 LB: > { %s607_s7 = sadd.s32 4294967295, %s708_s6   ;;  %p611_p0 = scmp.ge.s32.totalorder %s708_s6, 1  ;;  %s708_s6 = sphi %s734_s6, %s11_s6  }
   0x2   : > { %p87_p1 = scmp.lt.s32.totalorder %s708_s6, 3 }
   0x4   : > { %p88_p2 = pnand %p611_p0, %p87_p1 }
   0x5   : > { %p107_p3 = scmp.lt.s32.totalorder (!%p88_p2), %s607_s7, 1  ;;  %s710_s12 = smov (!%p88_p2), 112  }
   0x6   : > { %91 = sbr.rel (%p88_p2) target bundleno = 1196 (0x4ac), region = 24  ;;  %s711_s13 = smov (!%p88_p2), 124  }
   0x7   : > { %s712_s14 = smov (!%p88_p2), 108   ;;  %s713_s15 = smov (!%p88_p2), 96  }
   0x8   : > { %s714_s16 = smov (!%p88_p2), 104   ;;  %s715_s17 = smov (!%p88_p2), 120  }
   0x9   : > { %s716_s18 = smov (!%p88_p2), 100   ;;  %s717_s19 = smov (!%p88_p2), 116  }
   0xa   : > { %s718_s20 = smov (!%p88_p2), 92   ;;  %s719_s21 = smov (!%p88_p2), 88  }
   0xb   : > { %s845_s7 = smov (!%p107_p3, %s607_s7), 1  ;;  %vm125_vm0 = vcmask 31744   ;;  %vm159_vm1 = vcmask 97280   ;;  %vm163_vm2 = vcmask 93184   ;;  %vm194_vm3 = vcmask 1043456   ;;  %s720_s22 = smov 84  }
   0xc   : > { %s646_s8 = sshll.u32 %s845_s7, 4  ;;  %s721_s23 = smov 4   ;;  %vm543_vm4 = vcmask 64512   ;;  %vm548_vm5 = vcmask 130048   ;;  %vm550_vm6 = vcmask 125952  }
   0xd   : > { %s111_s11 = scalar_lea.vmem %s842_s0, %s646_s8  ;;  %s722_s24 = smov 8  }
   0xe   : > { %v750_v0 = vld [vmem:[%s111_s11 + $0x8] sm:$0xf]  ;;  %v752_v1 = vld [vmem:[%s111_s11] sm:$0xff]  ;;  %s723_s25 = smov 12   ;;  %s116_s28 = scalar_lea.vmem %s843_s1, %s646_s8 }
   0xf   : > { %123 = vrot.lane.b32.xlu0 %v750_v0, %s710_s12  ;;  %220 = vrot.lane.b32.xlu1 %v752_v1, %s711_s13 }
  0x10   : > { %226 = vrot.lane.b32.xlu2 %v750_v0, %s712_s14 }
  0x17   : > { %121 = vrot.lane.b32.xlu0 %v752_v1, %s710_s12 }
  0x18   : > { %325 = vrot.lane.b32.xlu2 %v750_v0, %s714_s16 }
  0x1f   : > { %224 = vrot.lane.b32.xlu0 %v752_v1, %s712_s14 }
  0x20   : > { %319 = vrot.lane.b32.xlu2 %v752_v1, %s715_s17 }
  0x27   : > { %185 = vrot.lane.b32.xlu0 %v750_v0, %s713_s15 }
  0x6a   : > { %v227_v2 = vpop.permute.xlu2 %226 }
  0x6b   : > { %623 = vmatpush.xpose.msk.msra.mxu2 %vm125_vm0, %v227_v2 }
  0x72   : > { %v326_v27 = vpop.permute.xlu2 %325 }
  0x7a   : > { %v320_v33 = vpop.permute.xlu2 %319 }
  0x81   : > { %v124_v3 = vpop.permute.xlu0 %123  ;;  %v221_v6 = vpop.permute.xlu1 %220 }
  0x82   : > { %616 = vmatpush.xpose.msk.msra.mxu0 %vm125_vm0, %v124_v3 }
  0x89   : > { %v122_v4 = vpop.permute.xlu0 %121 }
  0x8a   : > { %617 = vmatpush.xpose.msk.msra.mxu0 %vm125_vm0, %v122_v4 }
  0x8d   : > { %618 = vmatmul.msk.f32.vlgmr.msra.gmra.mxu0 %vm125_vm0, %v752_v1 }
  0x91   : > { %v225_v5 = vpop.permute.xlu0 %224 }
  0x92   : > { %624 = vmatpush.xpose.msk.msra.mxu2 %vm125_vm0, %v225_v5 }
  0x95   : > { %619 = vmatmul.msk.f32.gmra.mxu0 %vm125_vm0, %v750_v0  ;;  %625 = vmatmul.msk.f32.vlgmr.msra.gmra.mxu2 %vm125_vm0, %v221_v6 }
  0x99   : > { %v186_v21 = vpop.permute.xlu0 %185 }
  0x9a   : > { %620 = vmatpush.msk.msra.mxu1 %vm194_vm3, %v186_v21 }
 0x10a   : > { %v151_v7 = vpop.f32.mrf.mxu0 }
 0x10b   : > { %v157_v8 = vmul.f32 0.5, %v151_v7 }
 0x10d   : > { %v160_v9 = vsel %vm159_vm1, %v157_v8, -inf }
 0x10e   : > { %161 = vmax.xlane.f32.xlu1 %v160_v9 }
 0x112   : > { %v154_v10 = vpop.f32.mrf.mxu0 }
 0x113   : > { %v158_v11 = vmul.f32 0.5, %v154_v10 }
 0x115   : > { %v164_v12 = vsel %vm163_vm2, %v158_v11, -inf }
 0x116   : > { %165 = vmax.xlane.f32.xlu1 %v164_v12 }
 0x118   : > { %v253_v13 = vpop.f32.mrf.mxu2 }
 0x119   : > { %v259_v14 = vmul.f32 0.5, %v253_v13 }
 0x11b   : > { %v261_v15 = vsel %vm159_vm1, %v259_v14, -inf }
 0x12f   : > { %183 = vrot.lane.b32.xlu1 %v752_v1, %s713_s15 }
 0x137   : > { %222 = vrot.lane.b32.xlu1 %v750_v0, %s711_s13 }
 0x13f   : > { %424 = vrot.lane.b32.xlu1 %v750_v0, %s716_s18 }
 0x147   : > { %323 = vrot.lane.b32.xlu1 %v752_v1, %s714_s16 }
 0x14f   : > { %422 = vrot.lane.b32.xlu1 %v752_v1, %s716_s18 }
 0x157   : > { %321 = vrot.lane.b32.xlu1 %v750_v0, %s715_s17 }
 0x181   : > { %v162_v16 = vpop.xlane.xlu1 %161  ;;  %262 = vmax.xlane.f32.xlu1 %v261_v15 }
 0x182   : > { %v167_v17 = vsub.f32 %v157_v8, %v162_v16 }
 0x184   : > { %v169_v18 = vmul.f32 1.442695, %v167_v17 }
 0x186   : > { %670 = vpow2.f32 %v169_v18 }
 0x189   : > { %v166_v19 = vpop.xlane.xlu1 %165 }
 0x18a   : > { %v168_v20 = vsub.f32 %v158_v11, %v166_v19 }
 0x18c   : > { %v671_v22 = vpop.eup %670  ;;  %v171_v23 = vmul.f32 1.442695, %v168_v20 }
 0x18d   : > { %v173_v24 = vsel %vm159_vm1, %v671_v22, 0.0 }
 0x18e   : > { %672 = vpow2.f32 %v171_v23  ;;  %174 = vadd.xlane.f32.xlu2 %v173_v24 }
 0x194   : > { %v673_v25 = vpop.eup %672 }
 0x195   : > { %v176_v26 = vsel %vm163_vm2, %v673_v25, 0.0 }
 0x196   : > { %177 = vadd.xlane.f32.xlu0 %v176_v26 }
 0x1a1   : > { %v184_v28 = vpop.permute.xlu1 %183 }
 0x1a2   : > { %212 = vmatpush.msra.mxu1 %v184_v28 }
 0x1a4   : > { %630 = vmatpush.xpose.msk.msrb.mxu1 %vm125_vm0, %v326_v27 }
 0x1a6   : > { %420 = vrot.lane.b32.xlu2 %v750_v0, %s717_s19 }
 0x1a9   : > { %v223_v29 = vpop.permute.xlu1 %222 }
 0x1aa   : > { %418 = vrot.lane.b32.xlu0 %v752_v1, %s717_s19  ;;  %626 = vmatmul.msk.f32.gmra.mxu2 %vm125_vm0, %v223_v29 }
 0x1b1   : > { %v425_v30 = vpop.permute.xlu1 %424 }
 0x1b2   : > { %637 = vmatpush.xpose.msk.msrb.mxu0 %vm125_vm0, %v425_v30 }
 0x1b9   : > { %v324_v31 = vpop.permute.xlu1 %323 }
 0x1ba   : > { %631 = vmatpush.xpose.msk.msrb.mxu1 %vm125_vm0, %v324_v31 }
 0x1c1   : > { %v423_v32 = vpop.permute.xlu1 %422 }
 0x1c2   : > { %638 = vmatpush.xpose.msk.msrb.mxu0 %vm125_vm0, %v423_v32 }
 0x1c9   : > { %v322_v41 = vpop.permute.xlu1 %321 }
 0x1f4   : > { %v263_v48 = vpop.xlane.xlu1 %262 }
 0x1f5   : > { %v267_v49 = vsub.f32 %v259_v14, %v263_v48 }
 0x1f7   : > { %v269_v50 = vmul.f32 1.442695, %v267_v49 }
 0x201   : > { %v175_v34 = vpop.xlane.xlu2 %174 }
 0x202   : > { %674 = vrcp.f32 %v175_v34 }
 0x208   : > { %v675_v35 = vpop.eup %674 }
 0x209   : > { %v178_v36 = vpop.xlane.xlu0 %177  ;;  %v181_v37 = vmul.f32 %v675_v35, %v671_v22  ;;  %v421_v42 = vpop.permute.xlu2 %420 }
 0x20a   : > { %676 = vrcp.f32 %v178_v36 }
 0x20b   : > { %621 = vmatmul.msk.f32.vlgmr.msra.gmra.mxu1 %vm159_vm1, %v181_v37  ;;  %678 = vpow2.f32 %v269_v50 }
 0x210   : > { %v677_v38 = vpop.eup %676 }
 0x211   : > { %v182_v39 = vmul.f32 %v677_v38, %v673_v25  ;;  %v679_v59 = vpop.eup %678 }
 0x212   : > { %v273_v3 = vsel %vm159_vm1, %v679_v59, 0.0 }
 0x213   : > { %622 = vmatmul.msk.f32.gmra.mxu1 %vm159_vm1, %v182_v39 }
 0x21b   : > { %632 = vmatmul.msk.f32.vlgmr.msrb.gmra.mxu1 %vm125_vm0, %v320_v33 }
 0x21c   : > { %v419_v40 = vpop.permute.xlu0 %418 }
 0x21d   : > { %639 = vmatmul.msk.f32.vlgmr.msrb.gmra.mxu0 %vm125_vm0, %v419_v40 }
 0x223   : > { %633 = vmatmul.msk.f32.gmra.mxu1 %vm125_vm0, %v322_v41 }
 0x225   : > { %640 = vmatmul.msk.f32.gmra.mxu0 %vm125_vm0, %v421_v42 }
 0x22d   : > { %v256_v43 = vpop.f32.mrf.mxu2 }
 0x22e   : > { %v260_v44 = vmul.f32 0.5, %v256_v43 }
 0x230   : > { %v264_v45 = vsel %vm163_vm2, %v260_v44, -inf }
 0x231   : > { %265 = vmax.xlane.f32.xlu2 %v264_v45 }
 0x288   : > { %v799_v46 = vpop.f32.mrf.mxu1 }
 0x290   : > { %v801_v47 = vpop.f32.mrf.mxu1 }
 0x298   : > { %v352_v51 = vpop.f32.mrf.mxu1 }
 0x299   : > { %v358_v52 = vmul.f32 0.5, %v352_v51 }
 0x29a   : > { %v451_v53 = vpop.f32.mrf.mxu0 }
 0x29b   : > { %v457_v54 = vmul.f32 0.5, %v451_v53  ;;  %v360_v55 = vsel %vm159_vm1, %v358_v52, -inf }
 0x29c   : > { %361 = vmax.xlane.f32.xlu0 %v360_v55 }
 0x29d   : > { %v459_v56 = vsel %vm159_vm1, %v457_v54, -inf }
 0x29e   : > { %460 = vmax.xlane.f32.xlu2 %v459_v56 }
 0x2a0   : > { %v355_v57 = vpop.f32.mrf.mxu1 }
 0x2a1   : > { %v359_v58 = vmul.f32 0.5, %v355_v57 }
 0x2a2   : > { %v454_v60 = vpop.f32.mrf.mxu0 }
 0x2a3   : > { %v458_v61 = vmul.f32 0.5, %v454_v60  ;;  %v363_v62 = vsel %vm163_vm2, %v359_v58, -inf }
 0x2a4   : > { %v266_v63 = vpop.xlane.xlu2 %265  ;;  %364 = vmax.xlane.f32.xlu1 %v363_v62 }
 0x2a5   : > { %v268_v2 = vsub.f32 %v260_v44, %v266_v63  ;;  %v462_v4 = vsel %vm163_vm2, %v458_v61, -inf }
 0x2a6   : > { %274 = vadd.xlane.f32.xlu2 %v273_v3  ;;  %463 = vmax.xlane.f32.xlu0 %v462_v4 }
 0x2a7   : > { %v271_v5 = vmul.f32 1.442695, %v268_v2 }
 0x2a9   : > { %680 = vpow2.f32 %v271_v5 }
 0x2af   : > { %v681_v6 = vpop.eup %680 }
 0x2b0   : > { %v276_v7 = vsel %vm163_vm2, %v681_v6, 0.0 }
 0x2b1   : > { %277 = vadd.xlane.f32.xlu0 %v276_v7 }
 0x2bd   : > { %285 = vrot.lane.b32.xlu1 %v750_v0, %s718_s20 }
 0x2be   : > { %283 = vrot.lane.b32.xlu2 %v752_v1, %s718_s20 }
 0x2c5   : > { %384 = vrot.lane.b32.xlu1 %v750_v0, %s719_s21 }
 0x2c6   : > { %483 = vrot.lane.b32.xlu2 %v750_v0, %s720_s22 }
 0x2cd   : > { %382 = vrot.lane.b32.xlu1 %v752_v1, %s719_s21 }
 0x2ce   : > { %481 = vrot.lane.b32.xlu2 %v752_v1, %s720_s22 }
 0x30f   : > { %v362_v8 = vpop.xlane.xlu0 %361 }
 0x310   : > { %v366_v11 = vsub.f32 %v358_v52, %v362_v8 }
 0x311   : > { %v461_v9 = vpop.xlane.xlu2 %460 }
 0x312   : > { %v465_v10 = vsub.f32 %v457_v54, %v461_v9  ;;  %v368_v13 = vmul.f32 1.442695, %v366_v11 }
 0x314   : > { %v467_v12 = vmul.f32 1.442695, %v465_v10 }
 0x316   : > { %682 = vpow2.f32 %v467_v12 }
 0x317   : > { %v365_v14 = vpop.xlane.xlu1 %364  ;;  %684 = vpow2.f32 %v368_v13 }
 0x318   : > { %v367_v17 = vsub.f32 %v359_v58, %v365_v14 }
 0x319   : > { %v275_v15 = vpop.xlane.xlu2 %274  ;;  %v464_v19 = vpop.xlane.xlu0 %463 }
 0x31a   : > { %v370_v0 = vmul.f32 1.442695, %v367_v17  ;;  %v466_v1 = vsub.f32 %v458_v61, %v464_v19 }
 0x31c   : > { %v683_v16 = vpop.eup %682  ;;  %686 = vpow2.f32 %v370_v0  ;;  %v469_v23 = vmul.f32 1.442695, %v466_v1 }
 0x31d   : > { %v471_v18 = vsel %vm159_vm1, %v683_v16, 0.0  ;;  %v685_v21 = vpop.eup %684  ;;  %688 = vrcp.f32 %v275_v15 }
 0x31e   : > { %472 = vadd.xlane.f32.xlu0 %v471_v18  ;;  %v372_v22 = vsel %vm159_vm1, %v685_v21, 0.0  ;;  %690 = vpow2.f32 %v469_v23 }
 0x321   : > { %v284_v20 = vpop.permute.xlu2 %283 }
 0x322   : > { %v687_v25 = vpop.eup %686 }
 0x323   : > { %v375_v27 = vsel %vm163_vm2, %v687_v25, 0.0  ;;  %v689_v28 = vpop.eup %688 }
 0x324   : > { %v278_v26 = vpop.xlane.xlu0 %277  ;;  %v281_v30 = vmul.f32 %v689_v28, %v679_v59  ;;  %v691_v31 = vpop.eup %690 }
 0x325   : > { %692 = vrcp.f32 %v278_v26  ;;  %v474_v32 = vsel %vm163_vm2, %v691_v31, 0.0 }
 0x326   : > { %373 = vadd.xlane.f32.xlu0 %v372_v22 }
 0x329   : > { %v484_v24 = vpop.permute.xlu2 %483 }
 0x32a   : > { %641 = vmatpush.msk.msrb.mxu2 %vm194_vm3, %v484_v24 }
 0x32b   : > { %v693_v33 = vpop.eup %692 }
 0x32c   : > { %v282_v34 = vmul.f32 %v693_v33, %v681_v6 }
 0x32e   : > { %376 = vadd.xlane.f32.xlu0 %v375_v27 }
 0x32f   : > { %v286_v29 = vpop.permute.xlu1 %285 }
 0x330   : > { %627 = vmatpush.msk.msra.mxu3 %vm194_vm3, %v286_v29 }
 0x331   : > { %v482_v36 = vpop.permute.xlu2 %481 }
 0x332   : > { %311 = vmatpush.msra.mxu3 %v284_v20  ;;  %509 = vmatpush.msrb.mxu2 %v482_v36 }
 0x333   : > { %628 = vmatmul.msk.f32.vlgmr.msra.gmra.mxu3 %vm159_vm1, %v281_v30 }
 0x336   : > { %475 = vadd.xlane.f32.xlu0 %v474_v32 }
 0x337   : > { %v385_v35 = vpop.permute.xlu1 %384 }
 0x338   : > { %634 = vmatpush.msk.msrb.mxu3 %vm194_vm3, %v385_v35 }
 0x33b   : > { %629 = vmatmul.msk.f32.gmra.mxu3 %vm159_vm1, %v282_v34 }
 0x33f   : > { %v383_v37 = vpop.permute.xlu1 %382 }
 0x340   : > { %410 = vmatpush.msrb.mxu3 %v383_v37 }
 0x391   : > { %v473_v38 = vpop.xlane.xlu0 %472 }
 0x392   : > { %694 = vrcp.f32 %v473_v38 }
 0x398   : > { %v695_v39 = vpop.eup %694 }
 0x399   : > { %v374_v40 = vpop.xlane.xlu0 %373  ;;  %v479_v41 = vmul.f32 %v695_v39, %v683_v16 }
 0x39a   : > { %696 = vrcp.f32 %v374_v40 }
 0x39b   : > { %642 = vmatmul.msk.f32.vlgmr.msrb.gmra.mxu2 %vm159_vm1, %v479_v41 }
 0x3a0   : > { %v697_v42 = vpop.eup %696 }
 0x3a1   : > { %v377_v43 = vpop.xlane.xlu0 %376  ;;  %v380_v44 = vmul.f32 %v697_v42, %v685_v21 }
 0x3a2   : > { %698 = vrcp.f32 %v377_v43 }
 0x3a3   : > { %635 = vmatmul.msk.f32.vlgmr.msrb.gmra.mxu3 %vm159_vm1, %v380_v44 }
 0x3a8   : > { %v699_v45 = vpop.eup %698 }
 0x3a9   : > { %v476_v48 = vpop.xlane.xlu0 %475  ;;  %v381_v49 = vmul.f32 %v699_v45, %v687_v25 }
 0x3aa   : > { %700 = vrcp.f32 %v476_v48 }
 0x3ab   : > { %636 = vmatmul.msk.f32.gmra.mxu3 %vm159_vm1, %v381_v49 }
 0x3b0   : > { %v701_v50 = vpop.eup %700 }
 0x3b1   : > { %v480_v51 = vmul.f32 %v701_v50, %v691_v31 }
 0x3b3   : > { %643 = vmatmul.msk.f32.gmra.mxu2 %vm159_vm1, %v480_v51 }
 0x3b6   : > { %v313_v52 = vpop.f32.mrf.mxu3 }
 0x3b7   : > { %519 = vrot.lane.b32.xlu1 %v313_v52, %s721_s23 }
 0x3be   : > { %v316_v53 = vpop.f32.mrf.mxu3 }
 0x3bf   : > { %521 = vrot.lane.b32.xlu0 %v316_v53, %s721_s23 }
 0x41e   : > { %v511_v55 = vpop.f32.mrf.mxu2 }
 0x426   : > { %v412_v54 = vpop.f32.mrf.mxu3 }
 0x427   : > { %527 = vrot.lane.b32.xlu2 %v412_v54, %s722_s24 }
 0x429   : > { %v520_v59 = vpop.permute.xlu1 %519 }
 0x42a   : > { %v541_v60 = vsel %vm125_vm0, %v799_v46, %v520_v59 }
 0x42e   : > { %v415_v56 = vpop.f32.mrf.mxu3 }
 0x42f   : > { %535 = vrot.lane.b32.xlu2 %v511_v55, %s723_s25  ;;  %529 = vrot.lane.b32.xlu1 %v415_v56, %s722_s24 }
 0x431   : > { %v522_v3 = vpop.permute.xlu0 %521 }
 0x432   : > { %v542_v4 = vsel %vm125_vm0, %v801_v47, %v522_v3 }
 0x436   : > { %v514_v57 = vpop.f32.mrf.mxu2 }
 0x437   : > { %537 = vrot.lane.b32.xlu1 %v514_v57, %s723_s25 }
 0x481   : > { %v528_v58 = vpop.permute.xlu2 %527 }
 0x482   : > { %v544_v61 = vsel %vm543_vm4, %v541_v60, %v528_v58 }
 0x489   : > { %v536_v62 = vpop.permute.xlu2 %535 }
 0x48a   : > { %v546_v63 = vsel %vm159_vm1, %v544_v61, %v536_v62 }
 0x48b   : > { %549 = vst.msk [vmem:[%s116_s28] sm:$0xff] %vm548_vm5, %v546_v63 }
 0x4a1   : > { %v530_v2 = vpop.permute.xlu1 %529 }
 0x4a2   : > { %v545_v5 = vsel %vm543_vm4, %v542_v4, %v530_v2 }
 0x4a9   : > { %v538_v6 = vpop.permute.xlu1 %537 }
 0x4aa   : > { %v547_v46 = vsel %vm159_vm1, %v545_v5, %v538_v6 }
 0x4ab   : > { %551 = vst.msk [vmem:[%s116_s28 + $0x8] sm:$0xf] %vm550_vm6, %v547_v46 }
 0x4ac PF: > { %s11_s6 = sadd.s32 1, %s708_s6  }
 0x4ad   : > { %p8_p4 = scmp.ge.s32.totalorder %s11_s6, 4  }
 0x4af   :  { %10 = sbr.rel (!%p8_p4) target bundleno = 1 (0x1), region = 54 }

// kernel: predictor_forward.11
= control target key start
LH: loop header
LB: loop body
LE: loop exit
PB: predicated region body
PF: predicated region fallthrough
CT: control target
= control target key end

     0   :  { %vm25_vm0 = vcmask 130048   ;;  %v179_v6 = vmov 16.0   ;;  %vm152_vm11 = vcmask 392192   ;;  %s257_s0 = inlined_call_operand.vmem [shape: f32[24,16], index: 0, kind: input, shape index: {}]   ;;  %s258_s1 = inlined_call_operand.vmem [shape: f32[1,16], index: 1, kind: input, shape index: {}]   ;;  %s259_s2 = inlined_call_operand.vmem [shape: f32[1,16], index: 2, kind: input, shape index: {}]   ;;  %s260_s4 = inlined_call_operand.vmem [shape: f32[1,48], index: 4, kind: input, shape index: {}]   ;;  %s261_s3 = inlined_call_operand.vmem [shape: f32[16,48], index: 3, kind: input, shape index: {}]   ;;  %s262_s5 = inlined_call_operand.vmem [shape: f32[24,48], index: 5, kind: output, shape index: {}]  }
   0x1   :  { %v22_v0 = vld [vmem:[%s257_s0 + $0x10] sm:$0xff]  ;;  %v21_v1 = vld [vmem:[%s257_s0 + $0x8] sm:$0xff]  ;;  %v20_v4 = vld [vmem:[%s257_s0] sm:$0xff]  ;;  %171 = vrcp.f32 %v179_v6 }
   0x2   :  { %v32_v2 = vsel %vm25_vm0, %v22_v0, 0.0  ;;  %v29_v3 = vsel %vm25_vm0, %v21_v1, 0.0  ;;  %v26_v5 = vsel %vm25_vm0, %v20_v4, 0.0  ;;  %v112_v28 = vld [vmem:[%s261_s3 + $0x8] sm:$0xff]  ;;  %v111_v29 = vld [vmem:[%s261_s3] sm:$0xff] }
   0x3   :  { %33 = vadd.xlane.f32.xlu0 %v32_v2  ;;  %30 = vadd.xlane.f32.xlu1 %v29_v3  ;;  %v168_v47 = vld [vmem:[%s258_s1] ss:$0 sm:$0xff] }
   0x4   :  { %164 = vmatpush.msra.mxu2 %v112_v28  ;;  %140 = vmatpush.msra.mxu0 %v112_v28  ;;  %v169_v51 = vld [vmem:[%s259_s2] ss:$0 sm:$0xff] }
   0x5   :  { %163 = vmatpush.msra.mxu1 %v112_v28 }
   0x6   :  { %166 = vmatpush.msra.mxu2 %v111_v29  ;;  %141 = vmatpush.msra.mxu0 %v111_v29 }
   0x7   :  { %v172_v7 = vpop.eup %171  ;;  %165 = vmatpush.msra.mxu1 %v111_v29 }
   0x8   :  { %v36_v8 = vmul.f32 16.0, %v172_v7  ;;  %vm40_vm1 = vweird.f32 %v172_v7 }
   0xa   :  { %v37_v9 = vsub.f32 1.0, %v36_v8 }
   0xb   :  { %27 = vadd.xlane.f32.xlu0 %v26_v5 }
   0xc   :  { %v38_v10 = vmul.f32 %v172_v7, %v37_v9 }
   0xe   :  { %v39_v11 = vadd.f32 %v172_v7, %v38_v10 }
  0x10   :  { %v41_v12 = vsel %vm40_vm1, %v172_v7, %v39_v11  ;;  %v170_v7 = vld [vmem:[%s260_s4] ss:$0 sm:$0xff] }
  0x76   :  { %v34_v13 = vpop.xlane.xlu0 %33  ;;  %v31_v17 = vpop.xlane.xlu1 %30 }
  0x77   :  { %v44_v14 = vmul.f32 %v41_v12, %v34_v13  ;;  %v43_v21 = vmul.f32 %v41_v12, %v31_v17 }
  0x79   :  { %v47_v15 = vsub.f32 %v22_v0, %v44_v14  ;;  %v223_v23 = vsub.f32 %v21_v1, %v43_v21 }
  0x7b   :  { %v50_v16 = vmul.f32 %v47_v15, %v47_v15  ;;  %v49_v26 = vmul.f32 %v223_v23, %v223_v23 }
  0x7d   :  { %v57_v18 = vsel %vm25_vm0, %v50_v16, 0.0  ;;  %v54_v27 = vsel %vm25_vm0, %v49_v26, 0.0 }
  0x7e   :  { %58 = vadd.xlane.f32.xlu1 %v57_v18  ;;  %v28_v19 = vpop.xlane.xlu0 %27 }
  0x7f   :  { %v42_v20 = vmul.f32 %v41_v12, %v28_v19 }
  0x81   :  { %v45_v22 = vsub.f32 %v20_v4, %v42_v20 }
  0x83   :  { %v48_v24 = vmul.f32 %v45_v22, %v45_v22 }
  0x85   :  { %v51_v25 = vsel %vm25_vm0, %v48_v24, 0.0 }
  0x86   :  { %52 = vadd.xlane.f32.xlu2 %v51_v25 }
  0x8e   :  { %55 = vadd.xlane.f32.xlu2 %v54_v27 }
  0xf1   :  { %v59_v30 = vpop.xlane.xlu1 %58 }
  0xf2   :  { %v62_v31 = vmul.f32 %v59_v30, %v41_v12 }
  0xf4   :  { %v65_v32 = vadd.f32 1e-05, %v62_v31 }
  0xf6   :  { %173 = vrsqrt.f32 %v65_v32  ;;  %vm92_vm3 = vweird.f32 %v65_v32 }
  0xf9   :  { %v53_v33 = vpop.xlane.xlu2 %52 }
  0xfa   :  { %v60_v34 = vmul.f32 %v53_v33, %v41_v12 }
  0xfc   :  { %v174_v35 = vpop.eup %173  ;;  %v63_v36 = vadd.f32 1e-05, %v60_v34 }
  0xfd   :  { %v87_v37 = vmul.f32 %v174_v35, %v65_v32  ;;  %vm93_vm2 = vweird.f32 %v174_v35 }
  0xfe   :  { %175 = vrsqrt.f32 %v63_v36  ;;  %vm94_vm4 = vmor %vm92_vm3, %vm93_vm2  ;;  %vm72_vm6 = vweird.f32 %v63_v36 }
  0xff   :  { %v88_v38 = vmul.f32 %v174_v35, %v87_v37 }
 0x101   :  { %v89_v39 = vmul.f32 0.5, %v88_v38  ;;  %v56_v40 = vpop.xlane.xlu2 %55 }
 0x102   :  { %v61_v41 = vmul.f32 %v56_v40, %v41_v12 }
 0x103   :  { %v90_v42 = vsub.f32 1.5, %v89_v39 }
 0x104   :  { %v176_v43 = vpop.eup %175  ;;  %v64_v44 = vadd.f32 1e-05, %v61_v41 }
 0x105   :  { %v91_v45 = vmul.f32 %v174_v35, %v90_v42  ;;  %v67_v46 = vmul.f32 %v176_v43, %v63_v36  ;;  %vm73_vm5 = vweird.f32 %v176_v43 }
 0x106   :  { %177 = vrsqrt.f32 %v64_v44  ;;  %vm74_vm7 = vmor %vm72_vm6, %vm73_vm5  ;;  %vm82_vm9 = vweird.f32 %v64_v44 }
 0x107   :  { %v95_v48 = vsel %vm94_vm4, %v174_v35, %v91_v45  ;;  %v68_v49 = vmul.f32 %v176_v43, %v67_v46 }
 0x108   :  { %v98_v50 = vmul.f32 %v95_v48, %v47_v15 }
 0x109   :  { %v69_v52 = vmul.f32 0.5, %v68_v49 }
 0x10a   :  { %v104_v53 = vmul.f32 %v168_v47, %v98_v50 }
 0x10b   :  { %v70_v54 = vsub.f32 1.5, %v69_v52 }
 0x10c   :  { %v178_v55 = vpop.eup %177  ;;  %v110_v56 = vadd.f32 %v169_v51, %v104_v53 }
 0x10d   :  { %v71_v57 = vmul.f32 %v176_v43, %v70_v54  ;;  %v77_v58 = vmul.f32 %v178_v55, %v64_v44  ;;  %vm83_vm8 = vweird.f32 %v178_v55 }
 0x10e   :  { %162 = vmatmul.msk.f32.vlgmr.msra.gmra.mxu2 %vm25_vm0, %v110_v56  ;;  %vm84_vm10 = vmor %vm82_vm9, %vm83_vm8 }
 0x10f   :  { %v75_v59 = vsel %vm74_vm7, %v176_v43, %v71_v57  ;;  %v78_v60 = vmul.f32 %v178_v55, %v77_v58 }
 0x110   :  { %v96_v61 = vmul.f32 %v75_v59, %v45_v22 }
 0x111   :  { %v79_v62 = vmul.f32 0.5, %v78_v60 }
 0x112   :  { %v102_v63 = vmul.f32 %v168_v47, %v96_v61 }
 0x113   :  { %v80_v0 = vsub.f32 1.5, %v79_v62 }
 0x114   :  { %v108_v1 = vadd.f32 %v169_v51, %v102_v63 }
 0x115   :  { %v81_v2 = vmul.f32 %v178_v55, %v80_v0 }
 0x116   :  { %160 = vmatmul.msk.f32.vlgmr.msra.gmra.mxu0 %vm25_vm0, %v108_v1 }
 0x117   :  { %v85_v3 = vsel %vm84_vm10, %v178_v55, %v81_v2 }
 0x118   :  { %v97_v4 = vmul.f32 %v85_v3, %v223_v23 }
 0x11a   :  { %v103_v5 = vmul.f32 %v168_v47, %v97_v4 }
 0x11c   :  { %v109_v6 = vadd.f32 %v169_v51, %v103_v5 }
 0x11e   :  { %161 = vmatmul.msk.f32.vlgmr.msra.gmra.mxu1 %vm25_vm0, %v109_v6 }
 0x191   :  { %v149_v8 = vpop.f32.mrf.mxu2 }
 0x192   :  { %v150_v9 = vadd.f32 %v170_v7, %v149_v8 }
 0x193   :  { %v143_v10 = vpop.f32.mrf.mxu0 }
 0x194   :  { %155 = vst.msk [vmem:[%s262_s5 + $0x10] sm:$0xff] %vm152_vm11, %v150_v9  ;;  %v144_v11 = vadd.f32 %v170_v7, %v143_v10 }
 0x196   :  { %153 = vst.msk [vmem:[%s262_s5] sm:$0xff] %vm152_vm11, %v144_v11 }
 0x19b   :  { %v146_v12 = vpop.f32.mrf.mxu1 }
 0x19c   :  { %v147_v13 = vadd.f32 %v170_v7, %v146_v12 }
 0x19e   :  { %154 = vst.msk [vmem:[%s262_s5 + $0x8] sm:$0xff] %vm152_vm11, %v147_v13 }

// kernel: predictor_forward.10
= control target key start
LH: loop header
LB: loop body
LE: loop exit
PB: predicated region body
PF: predicated region fallthrough
CT: control target
= control target key end

     0   :  { %vm24_vm0 = vcmask 261120   ;;  %vm54_vm1 = vcmask 130048   ;;  %s115_s1 = inlined_call_operand.vmem [shape: f32[32,16], index: 1, kind: input, shape index: {}]   ;;  %s116_s2 = inlined_call_operand.vmem [shape: f32[1,16], index: 2, kind: input, shape index: {}]   ;;  %s117_s0 = inlined_call_operand.vmem [shape: f32[16,32], index: 0, kind: input, shape index: {}]   ;;  %s118_s3 = inlined_call_operand.vmem [shape: f32[16,16], index: 3, kind: output, shape index: {}]  }
   0x1   :  { %v19_v0 = vld [vmem:[%s115_s1 + $0x18] sm:$0xff]  ;;  %v18_v1 = vld [vmem:[%s115_s1 + $0x10] sm:$0xff]  ;;  %v17_v2 = vld [vmem:[%s115_s1 + $0x8] sm:$0xff] }
   0x2   :  { %43 = vmatpush.msra.mxu0 %v19_v0  ;;  %63 = vmatpush.msra.mxu1 %v19_v0  ;;  %v16_v3 = vld [vmem:[%s115_s1] sm:$0xff]  ;;  %v15_v5 = vld [vmem:[%s117_s0 + $0x8] sm:$0xff] }
   0x3   :  { %v14_v4 = vld [vmem:[%s117_s0] sm:$0xff] }
   0x4   :  { %44 = vmatpush.msra.mxu0 %v18_v1  ;;  %64 = vmatpush.msra.mxu1 %v18_v1  ;;  %v67_v6 = vld [vmem:[%s116_s2] ss:$0 sm:$0xff] }
   0x6   :  { %45 = vmatpush.msra.mxu0 %v17_v2  ;;  %65 = vmatpush.msra.mxu1 %v17_v2 }
   0x8   :  { %46 = vmatpush.msra.mxu0 %v16_v3  ;;  %66 = vmatpush.msra.mxu1 %v16_v3 }
   0x9   :  { %61 = vmatmul.msk.f32.vlgmr.msra.gmra.mxu0 %vm24_vm0, %v14_v4  ;;  %62 = vmatmul.msk.f32.vlgmr.msra.gmra.mxu1 %vm24_vm0, %v15_v5 }
  0x86   :  { %v48_v7 = vpop.f32.mrf.mxu0  ;;  %v51_v8 = vpop.f32.mrf.mxu1 }
  0x87   :  { %v49_v9 = vadd.f32 %v67_v6, %v48_v7  ;;  %v52_v10 = vadd.f32 %v67_v6, %v51_v8 }
  0x89   :  { %55 = vst.msk [vmem:[%s118_s3] sm:$0xff] %vm54_vm1, %v49_v9 }
  0x8a   :  { %56 = vst.msk [vmem:[%s118_s3 + $0x8] sm:$0xff] %vm54_vm1, %v52_v10 }

// kernel: predictor_forward.13
= control target key start
LH: loop header
LB: loop body
LE: loop exit
PB: predicated region body
PF: predicated region fallthrough
CT: control target
= control target key end

     0   :  { %vm26_vm0 = vcmask 130048   ;;  %s150_s1 = inlined_call_operand.vmem [shape: f32[16,16], index: 1, kind: input, shape index: {}]   ;;  %s151_s0 = inlined_call_operand.vmem [shape: f32[24,16], index: 0, kind: input, shape index: {}]   ;;  %s152_s2 = inlined_call_operand.vmem [shape: f32[1,16], index: 2, kind: input, shape index: {}]   ;;  %s153_s3 = inlined_call_operand.vmem [shape: f32[24,16], index: 3, kind: input, shape index: {}]   ;;  %s154_s4 = inlined_call_operand.vmem [shape: f32[24,16], index: 4, kind: output, shape index: {}]  }
   0x1   :  { %v21_v0 = vld [vmem:[%s150_s1 + $0x8] sm:$0xff]  ;;  %v20_v1 = vld [vmem:[%s150_s1] sm:$0xff]  ;;  %v19_v2 = vld [vmem:[%s151_s0 + $0x10] sm:$0xff] }
   0x2   :  { %79 = vmatpush.msra.mxu2 %v21_v0  ;;  %50 = vmatpush.msra.mxu0 %v21_v0  ;;  %v17_v3 = vld [vmem:[%s151_s0] sm:$0xff]  ;;  %v18_v4 = vld [vmem:[%s151_s0 + $0x8] sm:$0xff]  ;;  %v64_v15 = vld [vmem:[%s153_s3 + $0x10] sm:$0xff] }
   0x3   :  { %78 = vmatpush.msra.mxu1 %v21_v0  ;;  %v82_v5 = vld [vmem:[%s152_s2] ss:$0 sm:$0xff]  ;;  %v63_v9 = vld [vmem:[%s153_s3 + $0x8] sm:$0xff] }
   0x4   :  { %81 = vmatpush.msra.mxu2 %v20_v1  ;;  %51 = vmatpush.msra.mxu0 %v20_v1  ;;  %v62_v7 = vld [vmem:[%s153_s3] sm:$0xff] }
   0x5   :  { %77 = vmatmul.msk.f32.vlgmr.msra.gmra.mxu2 %vm26_vm0, %v19_v2  ;;  %80 = vmatpush.msra.mxu1 %v20_v1 }
   0x6   :  { %75 = vmatmul.msk.f32.vlgmr.msra.gmra.mxu0 %vm26_vm0, %v17_v3  ;;  %76 = vmatmul.msk.f32.vlgmr.msra.gmra.mxu1 %vm26_vm0, %v18_v4 }
  0x83   :  { %v53_v6 = vpop.f32.mrf.mxu0  ;;  %v56_v8 = vpop.f32.mrf.mxu1 }
  0x84   :  { %v54_v10 = vadd.f32 %v82_v5, %v53_v6  ;;  %v57_v11 = vadd.f32 %v82_v5, %v56_v8 }
  0x86   :  { %v65_v12 = vadd.f32 %v62_v7, %v54_v10  ;;  %v66_v13 = vadd.f32 %v63_v9, %v57_v11 }
  0x88   :  { %68 = vst.msk [vmem:[%s154_s4] sm:$0xff] %vm26_vm0, %v65_v12  ;;  %v59_v14 = vpop.f32.mrf.mxu2 }
  0x89   :  { %69 = vst.msk [vmem:[%s154_s4 + $0x8] sm:$0xff] %vm26_vm0, %v66_v13  ;;  %v60_v16 = vadd.f32 %v82_v5, %v59_v14 }
  0x8b   :  { %v67_v17 = vadd.f32 %v64_v15, %v60_v16 }
  0x8d   :  { %70 = vst.msk [vmem:[%s154_s4 + $0x10] sm:$0xff] %vm26_vm0, %v67_v17 }

// kernel: predictor_forward.19
= control target key start
LH: loop header
LB: loop body
LE: loop exit
PB: predicated region body
PF: predicated region fallthrough
CT: control target
= control target key end

     0   :  { %vm24_vm0 = vcmask 130048   ;;  %s201_s0 = inlined_call_operand.vmem [shape: f32[8,16], index: 0, kind: input, shape index: {}]   ;;  %s202_s1 = inlined_call_operand.vmem [shape: f32[1,16], index: 1, kind: input, shape index: {}]   ;;  %s203_s2 = inlined_call_operand.vmem [shape: f32[1,16], index: 2, kind: input, shape index: {}]   ;;  %s204_s3 = inlined_call_operand.vmem [shape: f32[16,32], index: 3, kind: input, shape index: {}]   ;;  %s205_s4 = inlined_call_operand.vmem [shape: f32[1,32], index: 4, kind: input, shape index: {}]   ;;  %s206_s5 = inlined_call_operand.hbm [shape: f32[8,32], index: 5, kind: output, shape index: {}]  }
   0x1   :  { %v21_v0 = vld [vmem:[%s201_s0] sm:$0xff] }
   0x2   :  { %v25_v1 = vsel %vm24_vm0, %v21_v0, 0.0 }
   0x3   :  { %26 = vadd.xlane.f32.xlu0 %v25_v1 }
   0x4   :  { %10 = vsyncpa [#allocation3], 0  ;;  %v145_v2 = vmov 16.0   ;;  %v63_v14 = vld [vmem:[%s204_s3 + $0x8] sm:$0xff]  ;;  %v62_v15 = vld [vmem:[%s204_s3] sm:$0xff]  ;;  %s146_s28 = smov [#allocation2]  }
   0x5   :  { %115 = vrcp.f32 %v145_v2  ;;  %85 = vmatpush.msra.mxu0 %v63_v14  ;;  %v112_v25 = vld [vmem:[%s202_s1] ss:$0 sm:$0xff]  ;;  %s98_s29 = sshll.u32 %s146_s28, 4  ;;  %s100_s1 = sshll.u32 %s206_s5, 4  ;;  %vm91_vm5 = vcmask 261120   ;;  %s99_s29 = int_to_ptr.vmem [resolvable:$true] %s98_s29  ;;  %s101_s1 = int_to_ptr.hbm [resolvable:$true] %s100_s1 }
   0x6   :  { %v113_v28 = vld [vmem:[%s203_s2] ss:$0 sm:$0xff] }
   0x7   :  { %86 = vmatpush.msra.mxu0 %v62_v15  ;;  %v114_v31 = vld [vmem:[%s205_s4] ss:$0 sm:$0xff] }
   0xb   :  { %v116_v3 = vpop.eup %115 }
   0xc   :  { %v29_v4 = vmul.f32 16.0, %v116_v3  ;;  %vm33_vm1 = vweird.f32 %v116_v3 }
   0xe   :  { %v30_v5 = vsub.f32 1.0, %v29_v4 }
  0x10   :  { %v31_v6 = vmul.f32 %v116_v3, %v30_v5 }
  0x12   :  { %v32_v7 = vadd.f32 %v116_v3, %v31_v6 }
  0x14   :  { %v34_v8 = vsel %vm33_vm1, %v116_v3, %v32_v7 }
  0x76   :  { %v27_v9 = vpop.xlane.xlu0 %26 }
  0x77   :  { %v35_v10 = vmul.f32 %v34_v8, %v27_v9 }
  0x79   :  { %v36_v11 = vsub.f32 %v21_v0, %v35_v10 }
  0x7b   :  { %v37_v12 = vmul.f32 %v36_v11, %v36_v11 }
  0x7d   :  { %v38_v13 = vsel %vm24_vm0, %v37_v12, 0.0 }
  0x7e   :  { %39 = vadd.xlane.f32.xlu0 %v38_v13 }
  0xf1   :  { %v40_v16 = vpop.xlane.xlu0 %39 }
  0xf2   :  { %v41_v17 = vmul.f32 %v40_v16, %v34_v8 }
  0xf4   :  { %v42_v18 = vadd.f32 1e-05, %v41_v17 }
  0xf6   :  { %117 = vrsqrt.f32 %v42_v18  ;;  %vm49_vm3 = vweird.f32 %v42_v18 }
  0xfc   :  { %v118_v19 = vpop.eup %117 }
  0xfd   :  { %v44_v20 = vmul.f32 %v118_v19, %v42_v18  ;;  %vm50_vm2 = vweird.f32 %v118_v19 }
  0xfe   :  { %vm51_vm4 = vmor %vm49_vm3, %vm50_vm2 }
  0xff   :  { %v45_v21 = vmul.f32 %v118_v19, %v44_v20 }
 0x101   :  { %v46_v22 = vmul.f32 0.5, %v45_v21 }
 0x103   :  { %v47_v23 = vsub.f32 1.5, %v46_v22 }
 0x105   :  { %v48_v24 = vmul.f32 %v118_v19, %v47_v23 }
 0x107   :  { %v52_v26 = vsel %vm51_vm4, %v118_v19, %v48_v24 }
 0x108   :  { %v53_v27 = vmul.f32 %v52_v26, %v36_v11 }
 0x10a   :  { %v57_v29 = vmul.f32 %v112_v25, %v53_v27 }
 0x10c   :  { %v61_v30 = vadd.f32 %v113_v28, %v57_v29 }
 0x10e   :  { %109 = vmatmul.msk.f32.vlgmr.msra.gmra.mxu0 %vm24_vm0, %v61_v30 }
 0x18b   :  { %v88_v32 = vpop.f32.mrf.mxu0 }
 0x18c   :  { %v89_v33 = vadd.f32 %v114_v31, %v88_v32 }
 0x18e   :  { %92 = vst.msk [vmem:[#allocation2] sm:$0xff] %vm91_vm5, %v89_v33 }
 0x18f   :  { %103 = dma.vmem_to_hbm [thread:$0]  %s99_s29, 128, %s101_s1, [#allocation3]  }
 0x190   :  { %143 = dma.done.wait [#allocation3], 128  }
 0x191   :  { %144 = vsyncadd [#allocation3], 4294967168 }
 0x192   :  { %108 = vsyncpa [#allocation3], 1 }

// kernel: predictor_forward.14
= control target key start
LH: loop header
LB: loop body
LE: loop exit
PB: predicated region body
PF: predicated region fallthrough
CT: control target
= control target key end

     0   :  { %vm31_vm0 = vcmask 130048   ;;  %v389_v6 = vmov 16.0   ;;  %s564_s0 = inlined_call_operand.vmem [shape: f32[24,16], index: 0, kind: input, shape index: {}]   ;;  %s565_s1 = inlined_call_operand.vmem [shape: f32[1,16], index: 1, kind: input, shape index: {}]   ;;  %s566_s2 = inlined_call_operand.vmem [shape: f32[1,16], index: 2, kind: input, shape index: {}]   ;;  %s567_s4 = inlined_call_operand.vmem [shape: f32[1,64], index: 4, kind: input, shape index: {}]   ;;  %s568_s3 = inlined_call_operand.vmem [shape: f32[16,64], index: 3, kind: input, shape index: {}]   ;;  %s569_s6 = inlined_call_operand.vmem [shape: f32[1,16], index: 6, kind: input, shape index: {}]   ;;  %s570_s5 = inlined_call_operand.vmem [shape: f32[64,16], index: 5, kind: input, shape index: {}]   ;;  %s571_s7 = inlined_call_operand.vmem [shape: f32[24,16], index: 7, kind: output, shape index: {}]  }
   0x1   :  { %v433_v0 = vld [vmem:[%s564_s0] sm:$0xff]  ;;  %v438_v1 = vld [vmem:[%s564_s0 + $0x10] sm:$0xff]  ;;  %v447_v4 = vld [vmem:[%s564_s0 + $0x8] sm:$0xff]  ;;  %369 = vrcp.f32 %v389_v6 }
   0x2   :  { %v32_v2 = vsel %vm31_vm0, %v433_v0, 0.0  ;;  %v38_v3 = vsel %vm31_vm0, %v438_v1, 0.0  ;;  %v35_v5 = vsel %vm31_vm0, %v447_v4, 0.0  ;;  %v118_v28 = vld [vmem:[%s568_s3 + $0x8] sm:$0xff]  ;;  %v117_v29 = vld [vmem:[%s568_s3] sm:$0xff] }
   0x3   :  { %33 = vadd.xlane.f32.xlu0 %v32_v2  ;;  %39 = vadd.xlane.f32.xlu1 %v38_v3  ;;  %v365_v47 = vld [vmem:[%s565_s1] ss:$0 sm:$0xff] }
   0x4   :  { %146 = vmatpush.msra.mxu0 %v118_v28  ;;  %v366_v51 = vld [vmem:[%s566_s2] ss:$0 sm:$0xff] }
   0x6   :  { %147 = vmatpush.msra.mxu0 %v117_v29  ;;  %v279_v29 = vld [vmem:[%s570_s5 + $0x8] sm:$0xff] }
   0x7   :  { %v370_v7 = vpop.eup %369 }
   0x8   :  { %v42_v8 = vmul.f32 16.0, %v370_v7  ;;  %vm46_vm1 = vweird.f32 %v370_v7 }
   0xa   :  { %v43_v9 = vsub.f32 1.0, %v42_v8 }
   0xb   :  { %36 = vadd.xlane.f32.xlu0 %v35_v5 }
   0xc   :  { %v44_v10 = vmul.f32 %v370_v7, %v43_v9 }
   0xe   :  { %v45_v11 = vadd.f32 %v370_v7, %v44_v10  ;;  %v367_v10 = vld [vmem:[%s567_s4] ss:$0 sm:$0xff] }
  0x10   :  { %v47_v12 = vsel %vm46_vm1, %v370_v7, %v45_v11 }
  0x76   :  { %v34_v13 = vpop.xlane.xlu0 %33  ;;  %v40_v17 = vpop.xlane.xlu1 %39 }
  0x77   :  { %v48_v14 = vmul.f32 %v47_v12, %v34_v13  ;;  %v50_v21 = vmul.f32 %v47_v12, %v40_v17 }
  0x79   :  { %v51_v15 = vsub.f32 %v433_v0, %v48_v14  ;;  %v455_v23 = vsub.f32 %v438_v1, %v50_v21 }
  0x7b   :  { %v54_v16 = vmul.f32 %v51_v15, %v51_v15  ;;  %v56_v26 = vmul.f32 %v455_v23, %v455_v23 }
  0x7d   :  { %v57_v18 = vsel %vm31_vm0, %v54_v16, 0.0  ;;  %v63_v27 = vsel %vm31_vm0, %v56_v26, 0.0  ;;  %v284_v16 = vld [vmem:[%s570_s5 + $0x30] sm:$0xff] }
  0x7e   :  { %58 = vadd.xlane.f32.xlu1 %v57_v18  ;;  %v37_v19 = vpop.xlane.xlu0 %36  ;;  %v280_v26 = vld [vmem:[%s570_s5 + $0x10] sm:$0xff] }
  0x7f   :  { %v49_v20 = vmul.f32 %v47_v12, %v37_v19  ;;  %v283_v19 = vld [vmem:[%s570_s5 + $0x28] sm:$0xff] }
  0x81   :  { %v52_v22 = vsub.f32 %v447_v4, %v49_v20 }
  0x83   :  { %v55_v24 = vmul.f32 %v52_v22, %v52_v22 }
  0x85   :  { %v60_v25 = vsel %vm31_vm0, %v55_v24, 0.0  ;;  %v281_v24 = vld [vmem:[%s570_s5 + $0x18] sm:$0xff] }
  0x86   :  { %61 = vadd.xlane.f32.xlu2 %v60_v25 }
  0x8e   :  { %64 = vadd.xlane.f32.xlu2 %v63_v27 }
  0xf1   :  { %v59_v30 = vpop.xlane.xlu1 %58 }
  0xf2   :  { %v66_v31 = vmul.f32 %v59_v30, %v47_v12 }
  0xf4   :  { %v69_v32 = vadd.f32 1e-05, %v66_v31 }
  0xf6   :  { %371 = vrsqrt.f32 %v69_v32  ;;  %vm78_vm3 = vweird.f32 %v69_v32 }
  0xf9   :  { %v62_v33 = vpop.xlane.xlu2 %61 }
  0xfa   :  { %v67_v34 = vmul.f32 %v62_v33, %v47_v12 }
  0xfc   :  { %v372_v35 = vpop.eup %371  ;;  %v70_v36 = vadd.f32 1e-05, %v67_v34  ;;  %v278_v34 = vld [vmem:[%s570_s5] sm:$0xff] }
  0xfd   :  { %v73_v37 = vmul.f32 %v372_v35, %v69_v32  ;;  %vm79_vm2 = vweird.f32 %v372_v35 }
  0xfe   :  { %373 = vrsqrt.f32 %v70_v36  ;;  %vm80_vm4 = vmor %vm78_vm3, %vm79_vm2  ;;  %vm88_vm6 = vweird.f32 %v70_v36 }
  0xff   :  { %v74_v38 = vmul.f32 %v372_v35, %v73_v37 }
 0x101   :  { %v75_v39 = vmul.f32 0.5, %v74_v38  ;;  %v65_v40 = vpop.xlane.xlu2 %64 }
 0x102   :  { %v68_v41 = vmul.f32 %v65_v40, %v47_v12 }
 0x103   :  { %v76_v42 = vsub.f32 1.5, %v75_v39 }
 0x104   :  { %v374_v43 = vpop.eup %373  ;;  %v71_v44 = vadd.f32 1e-05, %v68_v41 }
 0x105   :  { %v77_v45 = vmul.f32 %v372_v35, %v76_v42  ;;  %v83_v46 = vmul.f32 %v374_v43, %v70_v36  ;;  %vm89_vm5 = vweird.f32 %v374_v43 }
 0x106   :  { %375 = vrsqrt.f32 %v71_v44  ;;  %vm90_vm7 = vmor %vm88_vm6, %vm89_vm5  ;;  %vm98_vm9 = vweird.f32 %v71_v44 }
 0x107   :  { %v81_v48 = vsel %vm80_vm4, %v372_v35, %v77_v45  ;;  %v84_v49 = vmul.f32 %v374_v43, %v83_v46 }
 0x108   :  { %v102_v50 = vmul.f32 %v81_v48, %v51_v15  ;;  %v285_v15 = vld [vmem:[%s570_s5 + $0x38] sm:$0xff] }
 0x109   :  { %v85_v52 = vmul.f32 0.5, %v84_v49  ;;  %308 = vmatpush.msra.mxu1 %v285_v15  ;;  %348 = vmatpush.msra.mxu2 %v285_v15 }
 0x10a   :  { %v108_v53 = vmul.f32 %v365_v47, %v102_v50  ;;  %349 = vmatpush.msra.mxu3 %v285_v15 }
 0x10b   :  { %v86_v54 = vsub.f32 1.5, %v85_v52  ;;  %309 = vmatpush.msra.mxu1 %v284_v16  ;;  %350 = vmatpush.msra.mxu2 %v284_v16 }
 0x10c   :  { %v376_v55 = vpop.eup %375  ;;  %v114_v56 = vadd.f32 %v366_v51, %v108_v53  ;;  %351 = vmatpush.msra.mxu3 %v284_v16 }
 0x10d   :  { %v87_v57 = vmul.f32 %v374_v43, %v86_v54  ;;  %v93_v58 = vmul.f32 %v376_v55, %v71_v44  ;;  %vm99_vm8 = vweird.f32 %v376_v55  ;;  %310 = vmatpush.msra.mxu1 %v283_v19  ;;  %352 = vmatpush.msra.mxu2 %v283_v19 }
 0x10e   :  { %336 = vmatmul.msk.f32.vlgmr.msra.gmra.mxu0 %vm31_vm0, %v114_v56  ;;  %vm100_vm10 = vmor %vm98_vm9, %vm99_vm8  ;;  %353 = vmatpush.msra.mxu3 %v283_v19  ;;  %vm290_vm9 = vcmask 523264  }
 0x10f   :  { %v91_v59 = vsel %vm90_vm7, %v374_v43, %v87_v57  ;;  %v94_v60 = vmul.f32 %v376_v55, %v93_v58 }
 0x110   :  { %v103_v61 = vmul.f32 %v91_v59, %v52_v22  ;;  %v282_v22 = vld [vmem:[%s570_s5 + $0x20] sm:$0xff] }
 0x111   :  { %v95_v62 = vmul.f32 0.5, %v94_v60  ;;  %311 = vmatpush.msra.mxu1 %v282_v22  ;;  %354 = vmatpush.msra.mxu2 %v282_v22 }
 0x112   :  { %v109_v63 = vmul.f32 %v365_v47, %v103_v61  ;;  %355 = vmatpush.msra.mxu3 %v282_v22 }
 0x113   :  { %v96_v2 = vsub.f32 1.5, %v95_v62  ;;  %312 = vmatpush.msra.mxu1 %v281_v24  ;;  %356 = vmatpush.msra.mxu2 %v281_v24 }
 0x114   :  { %v115_v3 = vadd.f32 %v366_v51, %v109_v63  ;;  %357 = vmatpush.msra.mxu3 %v281_v24 }
 0x115   :  { %v97_v5 = vmul.f32 %v376_v55, %v96_v2  ;;  %313 = vmatpush.msra.mxu1 %v280_v26  ;;  %358 = vmatpush.msra.mxu2 %v280_v26 }
 0x116   :  { %337 = vmatmul.msk.f32.gmra.mxu0 %vm31_vm0, %v115_v3  ;;  %359 = vmatpush.msra.mxu3 %v280_v26 }
 0x117   :  { %v101_v6 = vsel %vm100_vm10, %v376_v55, %v97_v5  ;;  %314 = vmatpush.msra.mxu1 %v279_v29  ;;  %360 = vmatpush.msra.mxu2 %v279_v29 }
 0x118   :  { %v104_v7 = vmul.f32 %v101_v6, %v455_v23  ;;  %361 = vmatpush.msra.mxu3 %v279_v29 }
 0x119   :  { %315 = vmatpush.msra.mxu1 %v278_v34  ;;  %362 = vmatpush.msra.mxu2 %v278_v34 }
 0x11a   :  { %v110_v8 = vmul.f32 %v365_v47, %v104_v7  ;;  %363 = vmatpush.msra.mxu3 %v278_v34 }
 0x11c   :  { %v116_v9 = vadd.f32 %v366_v51, %v110_v8 }
 0x11e   :  { %338 = vmatmul.msk.f32.gmra.mxu0 %vm31_vm0, %v116_v9 }
 0x18b   :  { %v149_v11 = vpop.f32.mrf.mxu0 }
 0x18c   :  { %v480_v12 = vadd.f32 %v367_v10, %v149_v11 }
 0x18e   :  { %v483_v13 = vmul.f32 0.70710677, %v480_v12 }
 0x190   :  { %v486_v14 = vand.u32 2147483647, %v483_v13  ;;  %vm260_vm8 = vcmp.lt.f32.partialorder %v483_v13, 0.0 }
 0x192   :  { %v164_v17 = vmul.f32 0.3275911, %v486_v14  ;;  %v242_v48 = vsub.f32 0.0, %v486_v14 }
 0x193   :  { %v152_v18 = vpop.f32.mrf.mxu0 }
 0x194   :  { %v167_v20 = vadd.f32 1.0, %v164_v17  ;;  %v498_v21 = vadd.f32 %v367_v10, %v152_v18  ;;  %v245_v56 = vmul.f32 %v242_v48, %v486_v14 }
 0x196   :  { %377 = vrcp.f32 %v167_v20  ;;  %v504_v23 = vmul.f32 0.70710677, %v498_v21  ;;  %v181_v39 = vand.u32 2147483648, %v167_v20  ;;  %v179_v40 = vand.u32 2147483647, %v167_v20 }
 0x197   :  { %vm175_vm12 = vweird.f32 %v167_v20  ;;  %v248_v2 = vmul.f32 1.442695, %v245_v56 }
 0x198   :  { %v510_v25 = vand.u32 2147483647, %v504_v23  ;;  %v182_v45 = vor.u32 1.1754944e-38, %v181_v39  ;;  %vm180_vm14 = vcmp.eq.f32.partialorder %v179_v40, 8.507059e+37  ;;  %vm261_vm10 = vcmp.lt.f32.partialorder %v504_v23, 0.0 }
 0x19a   :  { %v165_v27 = vmul.f32 0.3275911, %v510_v25  ;;  %v243_v3 = vsub.f32 0.0, %v510_v25 }
 0x19b   :  { %v155_v28 = vpop.f32.mrf.mxu0 }
 0x19c   :  { %v378_v30 = vpop.eup %377  ;;  %v519_v31 = vadd.f32 %v367_v10, %v155_v28  ;;  %v168_v33 = vadd.f32 1.0, %v165_v27  ;;  %v246_v16 = vmul.f32 %v243_v3, %v510_v25 }
 0x19d   :  { %v171_v32 = vmul.f32 %v378_v30, %v167_v20  ;;  %vm176_vm11 = vweird.f32 %v378_v30 }
 0x19e   :  { %v525_v35 = vmul.f32 0.70710677, %v519_v31  ;;  %379 = vrcp.f32 %v168_v33  ;;  %vm177_vm13 = vmor %vm175_vm12, %vm176_vm11  ;;  %v196_v52 = vand.u32 2147483648, %v168_v33  ;;  %v194_v54 = vand.u32 2147483647, %v168_v33 }
 0x19f   :  { %v172_v36 = vsub.f32 1.0, %v171_v32  ;;  %vm190_vm1 = vweird.f32 %v168_v33  ;;  %v250_v29 = vmul.f32 1.442695, %v246_v16 }
 0x1a0   :  { %v528_v37 = vand.u32 2147483647, %v525_v35  ;;  %v197_v60 = vor.u32 1.1754944e-38, %v196_v52  ;;  %vm195_vm3 = vcmp.eq.f32.partialorder %v194_v54, 8.507059e+37  ;;  %vm262_vm11 = vcmp.lt.f32.partialorder %v525_v35, 0.0 }
 0x1a1   :  { %v173_v38 = vmul.f32 %v378_v30, %v172_v36 }
 0x1a2   :  { %v166_v41 = vmul.f32 0.3275911, %v528_v37  ;;  %v244_v24 = vsub.f32 0.0, %v528_v37 }
 0x1a3   :  { %v174_v42 = vadd.f32 %v378_v30, %v173_v38 }
 0x1a4   :  { %v169_v43 = vadd.f32 1.0, %v166_v41  ;;  %v380_v44 = vpop.eup %379  ;;  %v247_v25 = vmul.f32 %v244_v24, %v528_v37 }
 0x1a5   :  { %v178_v46 = vsel %vm177_vm13, %v378_v30, %v174_v42  ;;  %v186_v47 = vmul.f32 %v380_v44, %v168_v33  ;;  %vm191_vm15 = vweird.f32 %v380_v44 }
 0x1a6   :  { %381 = vrcp.f32 %v169_v43  ;;  %v183_v49 = vsel %vm180_vm14, %v182_v45, %v178_v46  ;;  %vm192_vm2 = vmor %vm190_vm1, %vm191_vm15  ;;  %v211_v7 = vand.u32 2147483648, %v169_v43  ;;  %v209_v11 = vand.u32 2147483647, %v169_v43 }
 0x1a7   :  { %v187_v50 = vsub.f32 1.0, %v186_v47  ;;  %v215_v51 = vmul.f32 1.0614054, %v183_v49  ;;  %383 = vpow2.f32 %v248_v2  ;;  %vm205_vm5 = vweird.f32 %v169_v43 }
 0x1a8   :  { %v212_v18 = vor.u32 1.1754944e-38, %v211_v7  ;;  %vm210_vm7 = vcmp.eq.f32.partialorder %v209_v11, 8.507059e+37  ;;  %385 = vpow2.f32 %v250_v29 }
 0x1a9   :  { %v188_v53 = vmul.f32 %v380_v44, %v187_v50  ;;  %v339_v55 = vadd.f32 -1.4531521, %v215_v51  ;;  %v269_v51 = vmul.f32 0.5, %v480_v12 }
 0x1ab   :  { %v221_v58 = vmul.f32 %v339_v55, %v183_v49  ;;  %v189_v59 = vadd.f32 %v380_v44, %v188_v53 }
 0x1ac   :  { %v382_v57 = vpop.eup %381 }
 0x1ad   :  { %v201_v61 = vmul.f32 %v382_v57, %v169_v43  ;;  %v224_v62 = vadd.f32 1.4214138, %v221_v58  ;;  %v193_v63 = vsel %vm192_vm2, %v380_v44, %v189_v59  ;;  %vm206_vm4 = vweird.f32 %v382_v57  ;;  %v384_v34 = vpop.eup %383 }
 0x1ae   :  { %v198_v6 = vsel %vm195_vm3, %v197_v60, %v193_v63  ;;  %vm207_vm6 = vmor %vm205_vm5, %vm206_vm4  ;;  %v252_v44 = vmul.f32 1.442695, %v247_v25  ;;  %v386_v50 = vpop.eup %385 }
 0x1af   :  { %v202_v5 = vsub.f32 1.0, %v201_v61  ;;  %v227_v8 = vmul.f32 %v224_v62, %v183_v49  ;;  %v216_v9 = vmul.f32 1.0614054, %v198_v6  ;;  %v270_v61 = vmul.f32 0.5, %v498_v21  ;;  %v368_v21 = vld [vmem:[%s569_s6] ss:$0 sm:$0xff] }
 0x1b0   :  { %387 = vpow2.f32 %v252_v44 }
 0x1b1   :  { %v203_v10 = vmul.f32 %v382_v57, %v202_v5  ;;  %v342_v14 = vadd.f32 -0.28449672, %v227_v8  ;;  %v340_v15 = vadd.f32 -1.4531521, %v216_v9 }
 0x1b3   :  { %v204_v17 = vadd.f32 %v382_v57, %v203_v10  ;;  %v233_v19 = vmul.f32 %v342_v14, %v183_v49  ;;  %v222_v20 = vmul.f32 %v340_v15, %v198_v6 }
 0x1b5   :  { %v208_v22 = vsel %vm207_vm6, %v382_v57, %v204_v17  ;;  %v236_v26 = vadd.f32 0.2548296, %v233_v19  ;;  %v225_v27 = vadd.f32 1.4214138, %v222_v20 }
 0x1b6   :  { %v213_v28 = vsel %vm210_vm7, %v212_v18, %v208_v22  ;;  %v388_v59 = vpop.eup %387 }
 0x1b7   :  { %v217_v30 = vmul.f32 1.0614054, %v213_v28  ;;  %v239_v32 = vmul.f32 %v236_v26, %v183_v49  ;;  %v228_v33 = vmul.f32 %v225_v27, %v198_v6 }
 0x1b9   :  { %v341_v36 = vadd.f32 -1.4531521, %v217_v30  ;;  %v254_v38 = vmul.f32 %v384_v34, %v239_v32  ;;  %v343_v39 = vadd.f32 -0.28449672, %v228_v33 }
 0x1bb   :  { %v223_v40 = vmul.f32 %v341_v36, %v213_v28  ;;  %v257_v41 = vsub.f32 1.0, %v254_v38  ;;  %v234_v42 = vmul.f32 %v343_v39, %v198_v6 }
 0x1bd   :  { %v226_v43 = vadd.f32 1.4214138, %v223_v40  ;;  %v263_v45 = vsub.f32 0.0, %v257_v41  ;;  %v237_v46 = vadd.f32 0.2548296, %v234_v42 }
 0x1bf   :  { %v229_v47 = vmul.f32 %v226_v43, %v213_v28  ;;  %v266_v48 = vsel %vm260_vm8, %v263_v45, %v257_v41  ;;  %v240_v49 = vmul.f32 %v237_v46, %v198_v6  ;;  %v271_v6 = vmul.f32 0.5, %v519_v31 }
 0x1c0   :  { %v272_v52 = vadd.f32 1.0, %v266_v48 }
 0x1c1   :  { %v344_v37 = vadd.f32 -0.28449672, %v229_v47  ;;  %v255_v53 = vmul.f32 %v386_v50, %v240_v49 }
 0x1c2   :  { %v275_v54 = vmul.f32 %v272_v52, %v269_v51 }
 0x1c3   :  { %v235_v55 = vmul.f32 %v344_v37, %v213_v28  ;;  %v258_v56 = vsub.f32 1.0, %v255_v53 }
 0x1c4   :  { %345 = vmatmul.msk.f32.vlgmr.msra.gmra.mxu1 %vm290_vm9, %v275_v54 }
 0x1c5   :  { %v238_v57 = vadd.f32 0.2548296, %v235_v55  ;;  %v264_v58 = vsub.f32 0.0, %v258_v56 }
 0x1c7   :  { %v241_v13 = vmul.f32 %v238_v57, %v213_v28  ;;  %v267_v60 = vsel %vm261_vm10, %v264_v58, %v258_v56 }
 0x1c8   :  { %v273_v12 = vadd.f32 1.0, %v267_v60 }
 0x1c9   :  { %v256_v62 = vmul.f32 %v388_v59, %v241_v13 }
 0x1ca   :  { %v276_v63 = vmul.f32 %v273_v12, %v270_v61 }
 0x1cb   :  { %v259_v2 = vsub.f32 1.0, %v256_v62 }
 0x1cc   :  { %346 = vmatmul.msk.f32.vlgmr.msra.gmra.mxu2 %vm290_vm9, %v276_v63 }
 0x1cd   :  { %v265_v3 = vsub.f32 0.0, %v259_v2 }
 0x1cf   :  { %v268_v5 = vsel %vm262_vm11, %v265_v3, %v259_v2 }
 0x1d0   :  { %v274_v7 = vadd.f32 1.0, %v268_v5 }
 0x1d2   :  { %v277_v8 = vmul.f32 %v274_v7, %v271_v6 }
 0x1d4   :  { %347 = vmatmul.msk.f32.vlgmr.msra.gmra.mxu3 %vm290_vm9, %v277_v8 }
 0x241   :  { %v317_v23 = vpop.f32.mrf.mxu1 }
 0x242   :  { %v318_v9 = vadd.f32 %v368_v21, %v317_v23 }
 0x244   :  { %v326_v10 = vadd.f32 %v318_v9, %v433_v0 }
 0x246   :  { %329 = vst.msk [vmem:[%s571_s7] sm:$0xff] %vm31_vm0, %v326_v10 }
 0x24f   :  { %v320_v35 = vpop.f32.mrf.mxu2 }
 0x250   :  { %v321_v11 = vadd.f32 %v368_v21, %v320_v35 }
 0x252   :  { %v327_v31 = vadd.f32 %v321_v11, %v447_v4 }
 0x254   :  { %330 = vst.msk [vmem:[%s571_s7 + $0x8] sm:$0xff] %vm31_vm0, %v327_v31 }
 0x257   :  { %v323_v14 = vpop.f32.mrf.mxu3 }
 0x258   :  { %v324_v15 = vadd.f32 %v368_v21, %v323_v14 }
 0x25a   :  { %v328_v16 = vadd.f32 %v324_v15, %v438_v1 }
 0x25c   :  { %331 = vst.msk [vmem:[%s571_s7 + $0x10] sm:$0xff] %vm31_vm0, %v328_v16 }

</bundles_post_ra>
